<compile_context>
chip_gen: v7x
topology: tpu7x:2x2x1
jax: 0.10.0
libtpu: 0.0.40
codegen_flags: <defaults>
</compile_context>

<pallas_src>
import functools

import jax
import jax.numpy as jnp
from jax.experimental import pallas as pl
from jax.experimental.pallas import tpu as pltpu


def _layernorm(h, gamma, beta, eps=1e-5):
    mean = jnp.mean(h, axis=-1, keepdims=True)
    var = jnp.mean(jnp.square(h - mean), axis=-1, keepdims=True)
    return (h - mean) * jax.lax.rsqrt(var + eps) * gamma + beta


def _gelu_exact(h):
    # matches torch.nn.GELU(approximate='none'): 0.5*x*(1+erf(x/sqrt(2)))
    return 0.5 * h * (1.0 + jax.lax.erf(h * 0.7071067811865476))


def final_layers_kernel(
    x_ref, supp_ref, mask_ref,
    w_sup_ref, wq_ref, w1_ref, w2_ref, pv_ref,
    mz_ref, pr_ref,
    *, mz_max_value, prob_threshold,
):
    TB, S, H = x_ref.shape
    F = wq_ref.shape[1]
    Hh = w1_ref.shape[1]

    # packed small params: rows [b_sup, g_sup, be_sup, bq, b1, b2, g_mlp, be_mlp, w_mz, w_pr, (b_mz,b_pr)]
    pv = pv_ref[...]                                   # (11, H)
    b_sup, g_sup, be_sup = pv[0:1, :], pv[1:2, :], pv[2:3, :]
    bq = pv[3:4, 0:F]
    b1, b2 = pv[4:5, 0:Hh], pv[5:6, 0:Hh]
    g_mlp, be_mlp = pv[6:7, 0:Hh], pv[7:8, 0:Hh]
    w_mz, w_pr = pv[8:9, 0:Hh], pv[9:10, 0:Hh]
    b_mz, b_pr = pv[10:11, 0:1], pv[10:11, 1:2]

    # ---- supplementary branch: Linear -> Dropout(identity, eval) -> LayerNorm -> GELU
    # TODO(synk): Dropout layers are treated as identity (eval mode); training-mode RNG dropout not implemented.
    s = jnp.dot(supp_ref[...], w_sup_ref[...], preferred_element_type=jnp.float32) + b_sup
    s = _layernorm(s, g_sup, be_sup)
    s = _gelu_exact(s)                                 # (TB, H)

    # ---- MultiQueryAttention scores: one dense (TB*S, H) @ (H, F) matmul, no transpose of x
    x3 = x_ref[...]                                    # (TB, S, H)
    x_flat = x3.reshape(TB * S, H)
    scores = jnp.dot(x_flat, wq_ref[...], preferred_element_type=jnp.float32) + bq
    scores = scores.reshape(TB, S, F)
    # finite large-negative mask (padded / fully-masked rows stay finite)
    scores = jnp.where(mask_ref[...] == 0.0, -1e30, scores)

    # softmax over the sequence axis
    m = jnp.max(scores, axis=1, keepdims=True)
    e = jnp.exp(scores - m)
    p = e / jnp.sum(e, axis=1, keepdims=True)          # (TB, S, F)

    # ---- attention weighted sum on the VPU (S=8 unrolled outer products), MXU stays free
    attn = jnp.zeros((TB, F, H), jnp.float32)
    for si in range(S):
        w_s = p[:, si, :].reshape(TB, F, 1)
        x_s = x3[:, si, :].reshape(TB, 1, H)
        attn = attn + w_s * x_s                        # (TB, F, H)

    # ---- fragments + broadcast supplementary, then MLP as flattened (TB*F, H) matmuls
    frag = attn + s.reshape(TB, 1, H)
    frag_flat = frag.reshape(TB * F, H)
    h1 = _gelu_exact(jnp.dot(frag_flat, w1_ref[...], preferred_element_type=jnp.float32) + b1)
    h2 = jnp.dot(h1, w2_ref[...], preferred_element_type=jnp.float32) + b2
    h2 = _layernorm(h2, g_mlp, be_mlp)                 # (TB*F, Hh)

    # ---- tiny Hh->1 heads on the VPU (N=2 matmul would waste the MXU)
    h2_3 = h2.reshape(TB, F, Hh)
    mz = jnp.sum(h2_3 * w_mz.reshape(1, 1, Hh), axis=-1) + b_mz    # (TB, F)
    pr = jnp.sum(h2_3 * w_pr.reshape(1, 1, Hh), axis=-1) + b_pr    # (TB, F)

    # ClampedReLU on mz
    mz = jnp.minimum(jnp.maximum(mz, 0.0), mz_max_value)

    # softmax over fragments, threshold, renormalize
    pm = jnp.max(pr, axis=-1, keepdims=True)
    pe = jnp.exp(pr - pm)
    probs = pe / jnp.sum(pe, axis=-1, keepdims=True)
    keep = (probs > prob_threshold).astype(jnp.float32)
    probs = probs * keep
    probs = probs / (jnp.sum(probs, axis=-1, keepdims=True) + 1e-10)
    mz = mz * keep

    mz_ref[...] = mz                                   # lane-dense (TB, F) writes
    pr_ref[...] = probs


def final_layers(x, supp, mask, params, *, mz_max_value=2000.0, prob_threshold=1e-4,
                 batch_tile=128):
    B, S, H = x.shape
    Dsup = supp.shape[1]
    F = params["wq_t"].shape[1]
    Hh = params["w1_t"].shape[1]

    def _round_up(a, m):
        return ((a + m - 1) // m) * m

    # Batch tile: multiple of 8 (sublane tile). Prefer >=2 grid steps for megacore (v7x);
    # even TB=512 is only a few MiB of VMEM here, so batch_tile can be raised freely.
    TB = min(_round_up(batch_tile, 8), _round_up(B, 8))
    Bp = _round_up(B, TB)

    x = jnp.asarray(x, jnp.float32)
    supp = jnp.asarray(supp, jnp.float32)
    mask3 = jnp.asarray(mask, jnp.float32)[:, :, None]          # (B, S, 1)
    if Bp != B:
        pad = Bp - B
        x = jnp.pad(x, ((0, pad), (0, 0), (0, 0)))
        supp = jnp.pad(supp, ((0, pad), (0, 0)))
        mask3 = jnp.pad(mask3, ((0, pad), (0, 0), (0, 0)))      # padded rows fully masked

    def _row(v):
        v = jnp.asarray(v, jnp.float32).reshape(1, -1)
        return jnp.pad(v, ((0, 0), (0, H - v.shape[1])))

    packed = jnp.concatenate([
        _row(params["b_sup"]), _row(params["g_sup"]), _row(params["be_sup"]),
        _row(params["bq"]),
        _row(params["b1"]), _row(params["b2"]),
        _row(params["g_mlp"]), _row(params["be_mlp"]),
        _row(params["w_mz"]), _row(params["w_pr"]),
        _row(jnp.concatenate([jnp.ravel(params["b_mz"]), jnp.ravel(params["b_pr"])])),
    ], axis=0)                                                  # (11, H)

    kernel = functools.partial(
        final_layers_kernel,
        mz_max_value=float(mz_max_value),
        prob_threshold=float(prob_threshold),
    )

    def full(shape):
        return pl.BlockSpec(shape, lambda b, n=len(shape): (0,) * n)

    mz, probs = pl.pallas_call(
        kernel,
        out_shape=(jax.ShapeDtypeStruct((Bp, F), jnp.float32),
                   jax.ShapeDtypeStruct((Bp, F), jnp.float32)),
        grid=(Bp // TB,),
        in_specs=[
            pl.BlockSpec((TB, S, H), lambda b: (b, 0, 0)),      # x
            pl.BlockSpec((TB, Dsup), lambda b: (b, 0)),         # supplementary_data
            pl.BlockSpec((TB, S, 1), lambda b: (b, 0, 0)),      # attention_mask
            full((Dsup, H)),                                    # supplementary linear weight
            full((H, F)),                                       # query heads (pre-transposed)
            full((H, Hh)), full((Hh, Hh)),                      # mlp fc1, fc2
            full((11, H)),                                      # packed biases / LN / head vectors
        ],
        out_specs=(pl.BlockSpec((TB, F), lambda b: (b, 0)),
                   pl.BlockSpec((TB, F), lambda b: (b, 0))),
        compiler_params=pltpu.CompilerParams(dimension_semantics=("parallel",)),
    )(x, supp, mask3,
      params["w_sup_t"], params["wq_t"], params["w1_t"], params["w2_t"], packed)

    return jnp.stack([mz[:B], probs[:B]], axis=-1)              # (B, F, 2): (mz, prob)


def final_layers_ref(x, supp, mask, p, mz_max_value, prob_threshold):
    """Pure-JAX reference mirroring the PyTorch forward (eval mode)."""
    s = supp @ p["w_sup_t"] + p["b_sup"]
    s = _layernorm(s, p["g_sup"], p["be_sup"])
    s = _gelu_exact(s)                                          # (B, H)
    scores = jnp.einsum("bsh,hf->bfs", x, p["wq_t"]) + p["bq"][None, :, None]
    scores = jnp.where(mask[:, None, :] == 0.0, -jnp.inf, scores)
    w = jax.nn.softmax(scores, axis=-1)
    attn = jnp.einsum("bfs,bsh->bfh", w, x)
    frag = attn + s[:, None, :]
    h1 = _gelu_exact(frag @ p["w1_t"] + p["b1"])
    h2 = h1 @ p["w2_t"] + p["b2"]
    h2 = _layernorm(h2, p["g_mlp"], p["be_mlp"])                # (B, F, Hh)
    mz = jnp.sum(h2 * p["w_mz"], axis=-1) + p["b_mz"]
    pr = jnp.sum(h2 * p["w_pr"], axis=-1) + p["b_pr"]
    mz = jnp.clip(mz, 0.0, mz_max_value)
    pr = jax.nn.softmax(pr, axis=1)
    keep = (pr > prob_threshold).astype(jnp.float32)
    pr = pr * keep
    pr = pr / (jnp.sum(pr, axis=1, keepdims=True) + 1e-10)
    mz = mz * keep
    return jnp.stack([mz, pr], axis=-1)


def init_params(key, H, Dsup, F):
    Hh = H // 2
    ks = jax.random.split(key, 12)
    n = lambda k, shape, scale: jax.random.normal(k, shape, jnp.float32) * scale
    return dict(
        w_sup_t=n(ks[0], (Dsup, H), Dsup ** -0.5),
        b_sup=n(ks[1], (H,), 0.02),
        g_sup=jnp.ones((H,), jnp.float32),
        be_sup=jnp.zeros((H,), jnp.float32),
        wq_t=n(ks[2], (H, F), H ** -0.5),
        bq=n(ks[3], (F,), 0.02),
        w1_t=n(ks[4], (H, Hh), H ** -0.5),
        b1=n(ks[5], (Hh,), 0.02),
        w2_t=n(ks[6], (Hh, Hh), Hh ** -0.5),
        b2=n(ks[7], (Hh,), 0.02),
        g_mlp=jnp.ones((Hh,), jnp.float32),
        be_mlp=jnp.zeros((Hh,), jnp.float32),
        w_mz=n(ks[8], (Hh,), Hh ** -0.5),
        b_mz=n(ks[9], (1,), 0.02),
        w_pr=n(ks[10], (Hh,), Hh ** -0.5),
        b_pr=n(ks[11], (1,), 0.02),
    )


if __name__ == "__main__":
    # batch, seq, hidden, supplementary dim, max_fragments
    B, S, H, Dsup, F = 12, 8, 32, 16, 8
    key = jax.random.PRNGKey(0)
    kx, ksup, kp = jax.random.split(key, 3)

    x = jax.random.normal(kx, (B, S, H), jnp.float32)
    supp = jax.random.normal(ksup, (B, Dsup), jnp.float32)
    lens = 1 + (jnp.arange(B) * 3) % S                          # 1..S valid tokens per row
    mask = (jnp.arange(S)[None, :] < lens[:, None]).astype(jnp.float32)

    params = init_params(kp, H, Dsup, F)

    # batch_tile=8 -> batch padded 12->16, grid of 2 parallel steps (exercises padding path)
    out = final_layers(x, supp, mask, params, mz_max_value=2000.0,
                       prob_threshold=1e-4, batch_tile=8)
    out = jax.block_until_ready(out)

    ref = final_layers_ref(x, supp, mask, params, 2000.0, 1e-4)
    assert out.shape == (B, F, 2), out.shape
    assert bool(jnp.all(jnp.isfinite(out)))
    assert bool(jnp.allclose(out, ref, rtol=1e-4, atol=1e-4)), (out, ref)
    print("KERNEL_OK")
</pallas_src>

<mosaic_0001>
module attributes {stable_mosaic.version = 11 : i64} {
  func.func @final_layers_kernel(%arg0: i32, %arg1: memref<8x8x32xf32, #tpu.memory_space<vmem>>, %arg2: memref<8x16xf32, #tpu.memory_space<vmem>>, %arg3: memref<8x8x1xf32, #tpu.memory_space<vmem>>, %arg4: memref<16x32xf32, #tpu.memory_space<vmem>>, %arg5: memref<32x8xf32, #tpu.memory_space<vmem>>, %arg6: memref<32x16xf32, #tpu.memory_space<vmem>>, %arg7: memref<16x16xf32, #tpu.memory_space<vmem>>, %arg8: memref<11x32xf32, #tpu.memory_space<vmem>>, %arg9: memref<8x8xf32, #tpu.memory_space<vmem>>, %arg10: memref<8x8xf32, #tpu.memory_space<vmem>>) attributes {dimension_semantics = [#tpu.dimension_semantics<parallel>], iteration_bounds = array<i64: 2>, scalar_prefetch = 0 : i64, scratch_operands = 0 : i64, tpu.core_type = #tpu.core_type<tc>, window_params = [{transform_indices = @transform_0, window_bounds = array<i64: 8, 8, 32>}, {transform_indices = @transform_1, window_bounds = array<i64: 8, 16>}, {transform_indices = @transform_2, window_bounds = array<i64: 8, 8, 1>}, {pipeline_mode = #tpu.pipeline_mode<synchronous>, transform_indices = @transform_3, window_bounds = array<i64: 16, 32>}, {pipeline_mode = #tpu.pipeline_mode<synchronous>, transform_indices = @transform_4, window_bounds = array<i64: 32, 8>}, {pipeline_mode = #tpu.pipeline_mode<synchronous>, transform_indices = @transform_5, window_bounds = array<i64: 32, 16>}, {pipeline_mode = #tpu.pipeline_mode<synchronous>, transform_indices = @transform_6, window_bounds = array<i64: 16, 16>}, {pipeline_mode = #tpu.pipeline_mode<synchronous>, transform_indices = @transform_7, window_bounds = array<i64: 11, 32>}, {transform_indices = @transform_8, window_bounds = array<i64: 8, 8>}, {transform_indices = @transform_9, window_bounds = array<i64: 8, 8>}]} {
    %c0 = arith.constant 0 : index
    %c0_0 = arith.constant 0 : index
    %0 = vector.load %arg8[%c0, %c0_0] : memref<11x32xf32, #tpu.memory_space<vmem>>, vector<11x32xf32>
    %1 = vector.extract_strided_slice %0 {offsets = [0, 0], sizes = [1, 32], strides = [1, 1]} : vector<11x32xf32> to vector<1x32xf32>
    %2 = vector.extract_strided_slice %0 {offsets = [1, 0], sizes = [1, 32], strides = [1, 1]} : vector<11x32xf32> to vector<1x32xf32>
    %3 = vector.extract_strided_slice %0 {offsets = [2, 0], sizes = [1, 32], strides = [1, 1]} : vector<11x32xf32> to vector<1x32xf32>
    %4 = vector.extract_strided_slice %0 {offsets = [3, 0], sizes = [1, 8], strides = [1, 1]} : vector<11x32xf32> to vector<1x8xf32>
    %5 = vector.extract_strided_slice %0 {offsets = [4, 0], sizes = [1, 16], strides = [1, 1]} : vector<11x32xf32> to vector<1x16xf32>
    %6 = vector.extract_strided_slice %0 {offsets = [5, 0], sizes = [1, 16], strides = [1, 1]} : vector<11x32xf32> to vector<1x16xf32>
    %7 = vector.extract_strided_slice %0 {offsets = [6, 0], sizes = [1, 16], strides = [1, 1]} : vector<11x32xf32> to vector<1x16xf32>
    %8 = vector.extract_strided_slice %0 {offsets = [7, 0], sizes = [1, 16], strides = [1, 1]} : vector<11x32xf32> to vector<1x16xf32>
    %9 = vector.extract_strided_slice %0 {offsets = [8, 0], sizes = [1, 16], strides = [1, 1]} : vector<11x32xf32> to vector<1x16xf32>
    %10 = vector.extract_strided_slice %0 {offsets = [9, 0], sizes = [1, 16], strides = [1, 1]} : vector<11x32xf32> to vector<1x16xf32>
    %11 = vector.extract_strided_slice %0 {offsets = [10, 0], sizes = [1, 1], strides = [1, 1]} : vector<11x32xf32> to vector<1x1xf32>
    %12 = vector.extract_strided_slice %0 {offsets = [10, 1], sizes = [1, 1], strides = [1, 1]} : vector<11x32xf32> to vector<1x1xf32>
    %c0_1 = arith.constant 0 : index
    %c0_2 = arith.constant 0 : index
    %13 = vector.load %arg2[%c0_1, %c0_2] : memref<8x16xf32, #tpu.memory_space<vmem>>, vector<8x16xf32>
    %c0_3 = arith.constant 0 : index
    %c0_4 = arith.constant 0 : index
    %14 = vector.load %arg4[%c0_3, %c0_4] : memref<16x32xf32, #tpu.memory_space<vmem>>, vector<16x32xf32>
    %cst = arith.constant dense<0.000000e+00> : vector<8x32xf32>
    %15 = tpu.matmul %13, %14, %cst {dimension_numbers = #tpu.dot_dimension_numbers<[1], [0], [0], [1], [0, 0, 1, 1], [], []>} : vector<8x16xf32>, vector<16x32xf32>, vector<8x32xf32> -> vector<8x32xf32>
    %16 = vector.broadcast %1 : vector<1x32xf32> to vector<8x32xf32>
    %17 = arith.addf %15, %16 : vector<8x32xf32>
    %cst_5 = arith.constant dense<0.000000e+00> : vector<8xf32>
    %18 = vector.multi_reduction <add>, %17, %cst_5 [1] : vector<8x32xf32> to vector<8xf32>
    %19 = vector.shape_cast %18 : vector<8xf32> to vector<8x1xf32>
    %cst_6 = arith.constant 3.200000e+01 : f32
    %20 = vector.broadcast %cst_6 : f32 to vector<8x1xf32>
    %21 = arith.divf %19, %20 : vector<8x1xf32>
    %22 = vector.broadcast %21 : vector<8x1xf32> to vector<8x32xf32>
    %23 = arith.subf %17, %22 : vector<8x32xf32>
    %24 = arith.mulf %23, %23 : vector<8x32xf32>
    %cst_7 = arith.constant dense<0.000000e+00> : vector<8xf32>
    %25 = vector.multi_reduction <add>, %24, %cst_7 [1] : vector<8x32xf32> to vector<8xf32>
    %26 = vector.shape_cast %25 : vector<8xf32> to vector<8x1xf32>
    %cst_8 = arith.constant 3.200000e+01 : f32
    %27 = vector.broadcast %cst_8 : f32 to vector<8x1xf32>
    %28 = arith.divf %26, %27 : vector<8x1xf32>
    %29 = vector.broadcast %21 : vector<8x1xf32> to vector<8x32xf32>
    %30 = arith.subf %17, %29 : vector<8x32xf32>
    %cst_9 = arith.constant 9.99999974E-6 : f32
    %31 = vector.broadcast %cst_9 : f32 to vector<8x1xf32>
    %32 = arith.addf %28, %31 : vector<8x1xf32>
    %33 = math.rsqrt %32 : vector<8x1xf32>
    %34 = vector.broadcast %33 : vector<8x1xf32> to vector<8x32xf32>
    %35 = arith.mulf %30, %34 : vector<8x32xf32>
    %36 = vector.broadcast %2 : vector<1x32xf32> to vector<8x32xf32>
    %37 = arith.mulf %35, %36 : vector<8x32xf32>
    %38 = vector.broadcast %3 : vector<1x32xf32> to vector<8x32xf32>
    %39 = arith.addf %37, %38 : vector<8x32xf32>
    %cst_10 = arith.constant 5.000000e-01 : f32
    %40 = vector.broadcast %cst_10 : f32 to vector<8x32xf32>
    %41 = arith.mulf %40, %39 : vector<8x32xf32>
    %cst_11 = arith.constant 0.707106769 : f32
    %42 = vector.broadcast %cst_11 : f32 to vector<8x32xf32>
    %43 = arith.mulf %39, %42 : vector<8x32xf32>
    %44 = math.erf %43 : vector<8x32xf32>
    %cst_12 = arith.constant 1.000000e+00 : f32
    %45 = vector.broadcast %cst_12 : f32 to vector<8x32xf32>
    %46 = arith.addf %45, %44 : vector<8x32xf32>
    %47 = arith.mulf %41, %46 : vector<8x32xf32>
    %c0_13 = arith.constant 0 : index
    %c0_14 = arith.constant 0 : index
    %c0_15 = arith.constant 0 : index
    %48 = vector.load %arg1[%c0_13, %c0_14, %c0_15] : memref<8x8x32xf32, #tpu.memory_space<vmem>>, vector<8x8x32xf32>
    %49 = vector.shape_cast %48 : vector<8x8x32xf32> to vector<64x32xf32>
    %c0_16 = arith.constant 0 : index
    %c0_17 = arith.constant 0 : index
    %50 = vector.load %arg5[%c0_16, %c0_17] : memref<32x8xf32, #tpu.memory_space<vmem>>, vector<32x8xf32>
    %cst_18 = arith.constant dense<0.000000e+00> : vector<64x8xf32>
    %51 = tpu.matmul %49, %50, %cst_18 {dimension_numbers = #tpu.dot_dimension_numbers<[1], [0], [0], [1], [0, 0, 1, 1], [], []>} : vector<64x32xf32>, vector<32x8xf32>, vector<64x8xf32> -> vector<64x8xf32>
    %52 = vector.broadcast %4 : vector<1x8xf32> to vector<64x8xf32>
    %53 = arith.addf %51, %52 : vector<64x8xf32>
    %54 = vector.shape_cast %53 : vector<64x8xf32> to vector<8x8x8xf32>
    %c0_19 = arith.constant 0 : index
    %c0_20 = arith.constant 0 : index
    %c0_21 = arith.constant 0 : index
    %55 = vector.load %arg3[%c0_19, %c0_20, %c0_21] : memref<8x8x1xf32, #tpu.memory_space<vmem>>, vector<8x8x1xf32>
    %cst_22 = arith.constant 0.000000e+00 : f32
    %56 = vector.broadcast %cst_22 : f32 to vector<8x8x1xf32>
    %57 = arith.cmpf oeq, %55, %56 : vector<8x8x1xf32>
    %cst_23 = arith.constant -1.000000e+30 : f32
    %58 = vector.shape_cast %57 : vector<8x8x1xi1> to vector<8x8x1xi1>
    %59 = vector.broadcast %58 : vector<8x8x1xi1> to vector<8x8x8xi1>
    %60 = vector.broadcast %cst_23 : f32 to vector<8x8x8xf32>
    %61 = arith.select %59, %60, %54 : vector<8x8x8xi1>, vector<8x8x8xf32>
    %cst_24 = arith.constant dense<0xFF800000> : vector<8x8xf32>
    %62 = vector.multi_reduction <maximumf>, %61, %cst_24 [1] : vector<8x8x8xf32> to vector<8x8xf32>
    %63 = vector.shape_cast %62 : vector<8x8xf32> to vector<8x1x8xf32>
    %64 = vector.broadcast %63 : vector<8x1x8xf32> to vector<8x8x8xf32>
    %65 = arith.subf %61, %64 : vector<8x8x8xf32>
    %66 = math.exp %65 : vector<8x8x8xf32>
    %cst_25 = arith.constant dense<0.000000e+00> : vector<8x8xf32>
    %67 = vector.multi_reduction <add>, %66, %cst_25 [1] : vector<8x8x8xf32> to vector<8x8xf32>
    %68 = vector.shape_cast %67 : vector<8x8xf32> to vector<8x1x8xf32>
    %69 = vector.broadcast %68 : vector<8x1x8xf32> to vector<8x8x8xf32>
    %70 = arith.divf %66, %69 : vector<8x8x8xf32>
    %cst_26 = arith.constant 0.000000e+00 : f32
    %71 = vector.broadcast %cst_26 : f32 to vector<8x8x32xf32>
    %72 = vector.extract_strided_slice %70 {offsets = [0, 0, 0], sizes = [8, 1, 8], strides = [1, 1, 1]} : vector<8x8x8xf32> to vector<8x1x8xf32>
    %73 = vector.shape_cast %72 : vector<8x1x8xf32> to vector<8x8xf32>
    %74 = vector.shape_cast %73 : vector<8x8xf32> to vector<8x8x1xf32>
    %75 = vector.extract_strided_slice %48 {offsets = [0, 0, 0], sizes = [8, 1, 32], strides = [1, 1, 1]} : vector<8x8x32xf32> to vector<8x1x32xf32>
    %76 = vector.shape_cast %75 : vector<8x1x32xf32> to vector<8x32xf32>
    %77 = vector.shape_cast %76 : vector<8x32xf32> to vector<8x1x32xf32>
    %78 = vector.broadcast %74 : vector<8x8x1xf32> to vector<8x8x32xf32>
    %79 = vector.broadcast %77 : vector<8x1x32xf32> to vector<8x8x32xf32>
    %80 = arith.mulf %78, %79 : vector<8x8x32xf32>
    %81 = arith.addf %71, %80 : vector<8x8x32xf32>
    %82 = vector.extract_strided_slice %70 {offsets = [0, 1, 0], sizes = [8, 1, 8], strides = [1, 1, 1]} : vector<8x8x8xf32> to vector<8x1x8xf32>
    %83 = vector.shape_cast %82 : vector<8x1x8xf32> to vector<8x8xf32>
    %84 = vector.shape_cast %83 : vector<8x8xf32> to vector<8x8x1xf32>
    %85 = vector.extract_strided_slice %48 {offsets = [0, 1, 0], sizes = [8, 1, 32], strides = [1, 1, 1]} : vector<8x8x32xf32> to vector<8x1x32xf32>
    %86 = vector.shape_cast %85 : vector<8x1x32xf32> to vector<8x32xf32>
    %87 = vector.shape_cast %86 : vector<8x32xf32> to vector<8x1x32xf32>
    %88 = vector.broadcast %84 : vector<8x8x1xf32> to vector<8x8x32xf32>
    %89 = vector.broadcast %87 : vector<8x1x32xf32> to vector<8x8x32xf32>
    %90 = arith.mulf %88, %89 : vector<8x8x32xf32>
    %91 = arith.addf %81, %90 : vector<8x8x32xf32>
    %92 = vector.extract_strided_slice %70 {offsets = [0, 2, 0], sizes = [8, 1, 8], strides = [1, 1, 1]} : vector<8x8x8xf32> to vector<8x1x8xf32>
    %93 = vector.shape_cast %92 : vector<8x1x8xf32> to vector<8x8xf32>
    %94 = vector.shape_cast %93 : vector<8x8xf32> to vector<8x8x1xf32>
    %95 = vector.extract_strided_slice %48 {offsets = [0, 2, 0], sizes = [8, 1, 32], strides = [1, 1, 1]} : vector<8x8x32xf32> to vector<8x1x32xf32>
    %96 = vector.shape_cast %95 : vector<8x1x32xf32> to vector<8x32xf32>
    %97 = vector.shape_cast %96 : vector<8x32xf32> to vector<8x1x32xf32>
    %98 = vector.broadcast %94 : vector<8x8x1xf32> to vector<8x8x32xf32>
    %99 = vector.broadcast %97 : vector<8x1x32xf32> to vector<8x8x32xf32>
    %100 = arith.mulf %98, %99 : vector<8x8x32xf32>
    %101 = arith.addf %91, %100 : vector<8x8x32xf32>
    %102 = vector.extract_strided_slice %70 {offsets = [0, 3, 0], sizes = [8, 1, 8], strides = [1, 1, 1]} : vector<8x8x8xf32> to vector<8x1x8xf32>
    %103 = vector.shape_cast %102 : vector<8x1x8xf32> to vector<8x8xf32>
    %104 = vector.shape_cast %103 : vector<8x8xf32> to vector<8x8x1xf32>
    %105 = vector.extract_strided_slice %48 {offsets = [0, 3, 0], sizes = [8, 1, 32], strides = [1, 1, 1]} : vector<8x8x32xf32> to vector<8x1x32xf32>
    %106 = vector.shape_cast %105 : vector<8x1x32xf32> to vector<8x32xf32>
    %107 = vector.shape_cast %106 : vector<8x32xf32> to vector<8x1x32xf32>
    %108 = vector.broadcast %104 : vector<8x8x1xf32> to vector<8x8x32xf32>
    %109 = vector.broadcast %107 : vector<8x1x32xf32> to vector<8x8x32xf32>
    %110 = arith.mulf %108, %109 : vector<8x8x32xf32>
    %111 = arith.addf %101, %110 : vector<8x8x32xf32>
    %112 = vector.extract_strided_slice %70 {offsets = [0, 4, 0], sizes = [8, 1, 8], strides = [1, 1, 1]} : vector<8x8x8xf32> to vector<8x1x8xf32>
    %113 = vector.shape_cast %112 : vector<8x1x8xf32> to vector<8x8xf32>
    %114 = vector.shape_cast %113 : vector<8x8xf32> to vector<8x8x1xf32>
    %115 = vector.extract_strided_slice %48 {offsets = [0, 4, 0], sizes = [8, 1, 32], strides = [1, 1, 1]} : vector<8x8x32xf32> to vector<8x1x32xf32>
    %116 = vector.shape_cast %115 : vector<8x1x32xf32> to vector<8x32xf32>
    %117 = vector.shape_cast %116 : vector<8x32xf32> to vector<8x1x32xf32>
    %118 = vector.broadcast %114 : vector<8x8x1xf32> to vector<8x8x32xf32>
    %119 = vector.broadcast %117 : vector<8x1x32xf32> to vector<8x8x32xf32>
    %120 = arith.mulf %118, %119 : vector<8x8x32xf32>
    %121 = arith.addf %111, %120 : vector<8x8x32xf32>
    %122 = vector.extract_strided_slice %70 {offsets = [0, 5, 0], sizes = [8, 1, 8], strides = [1, 1, 1]} : vector<8x8x8xf32> to vector<8x1x8xf32>
    %123 = vector.shape_cast %122 : vector<8x1x8xf32> to vector<8x8xf32>
    %124 = vector.shape_cast %123 : vector<8x8xf32> to vector<8x8x1xf32>
    %125 = vector.extract_strided_slice %48 {offsets = [0, 5, 0], sizes = [8, 1, 32], strides = [1, 1, 1]} : vector<8x8x32xf32> to vector<8x1x32xf32>
    %126 = vector.shape_cast %125 : vector<8x1x32xf32> to vector<8x32xf32>
    %127 = vector.shape_cast %126 : vector<8x32xf32> to vector<8x1x32xf32>
    %128 = vector.broadcast %124 : vector<8x8x1xf32> to vector<8x8x32xf32>
    %129 = vector.broadcast %127 : vector<8x1x32xf32> to vector<8x8x32xf32>
    %130 = arith.mulf %128, %129 : vector<8x8x32xf32>
    %131 = arith.addf %121, %130 : vector<8x8x32xf32>
    %132 = vector.extract_strided_slice %70 {offsets = [0, 6, 0], sizes = [8, 1, 8], strides = [1, 1, 1]} : vector<8x8x8xf32> to vector<8x1x8xf32>
    %133 = vector.shape_cast %132 : vector<8x1x8xf32> to vector<8x8xf32>
    %134 = vector.shape_cast %133 : vector<8x8xf32> to vector<8x8x1xf32>
    %135 = vector.extract_strided_slice %48 {offsets = [0, 6, 0], sizes = [8, 1, 32], strides = [1, 1, 1]} : vector<8x8x32xf32> to vector<8x1x32xf32>
    %136 = vector.shape_cast %135 : vector<8x1x32xf32> to vector<8x32xf32>
    %137 = vector.shape_cast %136 : vector<8x32xf32> to vector<8x1x32xf32>
    %138 = vector.broadcast %134 : vector<8x8x1xf32> to vector<8x8x32xf32>
    %139 = vector.broadcast %137 : vector<8x1x32xf32> to vector<8x8x32xf32>
    %140 = arith.mulf %138, %139 : vector<8x8x32xf32>
    %141 = arith.addf %131, %140 : vector<8x8x32xf32>
    %142 = vector.extract_strided_slice %70 {offsets = [0, 7, 0], sizes = [8, 1, 8], strides = [1, 1, 1]} : vector<8x8x8xf32> to vector<8x1x8xf32>
    %143 = vector.shape_cast %142 : vector<8x1x8xf32> to vector<8x8xf32>
    %144 = vector.shape_cast %143 : vector<8x8xf32> to vector<8x8x1xf32>
    %145 = vector.extract_strided_slice %48 {offsets = [0, 7, 0], sizes = [8, 1, 32], strides = [1, 1, 1]} : vector<8x8x32xf32> to vector<8x1x32xf32>
    %146 = vector.shape_cast %145 : vector<8x1x32xf32> to vector<8x32xf32>
    %147 = vector.shape_cast %146 : vector<8x32xf32> to vector<8x1x32xf32>
    %148 = vector.broadcast %144 : vector<8x8x1xf32> to vector<8x8x32xf32>
    %149 = vector.broadcast %147 : vector<8x1x32xf32> to vector<8x8x32xf32>
    %150 = arith.mulf %148, %149 : vector<8x8x32xf32>
    %151 = arith.addf %141, %150 : vector<8x8x32xf32>
    %152 = vector.shape_cast %47 : vector<8x32xf32> to vector<8x1x32xf32>
    %153 = vector.broadcast %152 : vector<8x1x32xf32> to vector<8x8x32xf32>
    %154 = arith.addf %151, %153 : vector<8x8x32xf32>
    %155 = vector.shape_cast %154 : vector<8x8x32xf32> to vector<64x32xf32>
    %c0_27 = arith.constant 0 : index
    %c0_28 = arith.constant 0 : index
    %156 = vector.load %arg6[%c0_27, %c0_28] : memref<32x16xf32, #tpu.memory_space<vmem>>, vector<32x16xf32>
    %cst_29 = arith.constant dense<0.000000e+00> : vector<64x16xf32>
    %157 = tpu.matmul %155, %156, %cst_29 {dimension_numbers = #tpu.dot_dimension_numbers<[1], [0], [0], [1], [0, 0, 1, 1], [], []>} : vector<64x32xf32>, vector<32x16xf32>, vector<64x16xf32> -> vector<64x16xf32>
    %158 = vector.broadcast %5 : vector<1x16xf32> to vector<64x16xf32>
    %159 = arith.addf %157, %158 : vector<64x16xf32>
    %cst_30 = arith.constant 5.000000e-01 : f32
    %160 = vector.broadcast %cst_30 : f32 to vector<64x16xf32>
    %161 = arith.mulf %160, %159 : vector<64x16xf32>
    %cst_31 = arith.constant 0.707106769 : f32
    %162 = vector.broadcast %cst_31 : f32 to vector<64x16xf32>
    %163 = arith.mulf %159, %162 : vector<64x16xf32>
    %164 = math.erf %163 : vector<64x16xf32>
    %cst_32 = arith.constant 1.000000e+00 : f32
    %165 = vector.broadcast %cst_32 : f32 to vector<64x16xf32>
    %166 = arith.addf %165, %164 : vector<64x16xf32>
    %167 = arith.mulf %161, %166 : vector<64x16xf32>
    %c0_33 = arith.constant 0 : index
    %c0_34 = arith.constant 0 : index
    %168 = vector.load %arg7[%c0_33, %c0_34] : memref<16x16xf32, #tpu.memory_space<vmem>>, vector<16x16xf32>
    %cst_35 = arith.constant dense<0.000000e+00> : vector<64x16xf32>
    %169 = tpu.matmul %167, %168, %cst_35 {dimension_numbers = #tpu.dot_dimension_numbers<[1], [0], [0], [1], [0, 0, 1, 1], [], []>} : vector<64x16xf32>, vector<16x16xf32>, vector<64x16xf32> -> vector<64x16xf32>
    %170 = vector.broadcast %6 : vector<1x16xf32> to vector<64x16xf32>
    %171 = arith.addf %169, %170 : vector<64x16xf32>
    %cst_36 = arith.constant dense<0.000000e+00> : vector<64xf32>
    %172 = vector.multi_reduction <add>, %171, %cst_36 [1] : vector<64x16xf32> to vector<64xf32>
    %173 = vector.shape_cast %172 : vector<64xf32> to vector<64x1xf32>
    %cst_37 = arith.constant 1.600000e+01 : f32
    %174 = vector.broadcast %cst_37 : f32 to vector<64x1xf32>
    %175 = arith.divf %173, %174 : vector<64x1xf32>
    %176 = vector.broadcast %175 : vector<64x1xf32> to vector<64x16xf32>
    %177 = arith.subf %171, %176 : vector<64x16xf32>
    %178 = arith.mulf %177, %177 : vector<64x16xf32>
    %cst_38 = arith.constant dense<0.000000e+00> : vector<64xf32>
    %179 = vector.multi_reduction <add>, %178, %cst_38 [1] : vector<64x16xf32> to vector<64xf32>
    %180 = vector.shape_cast %179 : vector<64xf32> to vector<64x1xf32>
    %cst_39 = arith.constant 1.600000e+01 : f32
    %181 = vector.broadcast %cst_39 : f32 to vector<64x1xf32>
    %182 = arith.divf %180, %181 : vector<64x1xf32>
    %183 = vector.broadcast %175 : vector<64x1xf32> to vector<64x16xf32>
    %184 = arith.subf %171, %183 : vector<64x16xf32>
    %cst_40 = arith.constant 9.99999974E-6 : f32
    %185 = vector.broadcast %cst_40 : f32 to vector<64x1xf32>
    %186 = arith.addf %182, %185 : vector<64x1xf32>
    %187 = math.rsqrt %186 : vector<64x1xf32>
    %188 = vector.broadcast %187 : vector<64x1xf32> to vector<64x16xf32>
    %189 = arith.mulf %184, %188 : vector<64x16xf32>
    %190 = vector.broadcast %7 : vector<1x16xf32> to vector<64x16xf32>
    %191 = arith.mulf %189, %190 : vector<64x16xf32>
    %192 = vector.broadcast %8 : vector<1x16xf32> to vector<64x16xf32>
    %193 = arith.addf %191, %192 : vector<64x16xf32>
    %194 = vector.shape_cast %193 : vector<64x16xf32> to vector<8x8x16xf32>
    %195 = vector.shape_cast %9 : vector<1x16xf32> to vector<1x1x16xf32>
    %196 = vector.broadcast %195 : vector<1x1x16xf32> to vector<8x8x16xf32>
    %197 = arith.mulf %194, %196 : vector<8x8x16xf32>
    %cst_41 = arith.constant dense<0.000000e+00> : vector<8x8xf32>
    %198 = vector.multi_reduction <add>, %197, %cst_41 [2] : vector<8x8x16xf32> to vector<8x8xf32>
    %199 = vector.broadcast %11 : vector<1x1xf32> to vector<8x8xf32>
    %200 = arith.addf %198, %199 : vector<8x8xf32>
    %201 = vector.shape_cast %10 : vector<1x16xf32> to vector<1x1x16xf32>
    %202 = vector.broadcast %201 : vector<1x1x16xf32> to vector<8x8x16xf32>
    %203 = arith.mulf %194, %202 : vector<8x8x16xf32>
    %cst_42 = arith.constant dense<0.000000e+00> : vector<8x8xf32>
    %204 = vector.multi_reduction <add>, %203, %cst_42 [2] : vector<8x8x16xf32> to vector<8x8xf32>
    %205 = vector.broadcast %12 : vector<1x1xf32> to vector<8x8xf32>
    %206 = arith.addf %204, %205 : vector<8x8xf32>
    %cst_43 = arith.constant 0.000000e+00 : f32
    %207 = vector.broadcast %cst_43 : f32 to vector<8x8xf32>
    %208 = arith.maximumf %200, %207 : vector<8x8xf32>
    %cst_44 = arith.constant 2.000000e+03 : f32
    %209 = vector.broadcast %cst_44 : f32 to vector<8x8xf32>
    %210 = arith.minimumf %208, %209 : vector<8x8xf32>
    %cst_45 = arith.constant dense<0xFF800000> : vector<8xf32>
    %211 = vector.multi_reduction <maximumf>, %206, %cst_45 [1] : vector<8x8xf32> to vector<8xf32>
    %212 = vector.shape_cast %211 : vector<8xf32> to vector<8x1xf32>
    %213 = vector.broadcast %212 : vector<8x1xf32> to vector<8x8xf32>
    %214 = arith.subf %206, %213 : vector<8x8xf32>
    %215 = math.exp %214 : vector<8x8xf32>
    %cst_46 = arith.constant dense<0.000000e+00> : vector<8xf32>
    %216 = vector.multi_reduction <add>, %215, %cst_46 [1] : vector<8x8xf32> to vector<8xf32>
    %217 = vector.shape_cast %216 : vector<8xf32> to vector<8x1xf32>
    %218 = vector.broadcast %217 : vector<8x1xf32> to vector<8x8xf32>
    %219 = arith.divf %215, %218 : vector<8x8xf32>
    %cst_47 = arith.constant 9.99999974E-5 : f32
    %220 = vector.broadcast %cst_47 : f32 to vector<8x8xf32>
    %221 = arith.cmpf ogt, %219, %220 : vector<8x8xf32>
    %222 = arith.extui %221 : vector<8x8xi1> to vector<8x8xi32>
    %223 = arith.sitofp %222 : vector<8x8xi32> to vector<8x8xf32>
    %224 = arith.mulf %219, %223 : vector<8x8xf32>
    %cst_48 = arith.constant dense<0.000000e+00> : vector<8xf32>
    %225 = vector.multi_reduction <add>, %224, %cst_48 [1] : vector<8x8xf32> to vector<8xf32>
    %226 = vector.shape_cast %225 : vector<8xf32> to vector<8x1xf32>
    %cst_49 = arith.constant 1.000000e-10 : f32
    %227 = vector.broadcast %cst_49 : f32 to vector<8x1xf32>
    %228 = arith.addf %226, %227 : vector<8x1xf32>
    %229 = vector.broadcast %228 : vector<8x1xf32> to vector<8x8xf32>
    %230 = arith.divf %224, %229 : vector<8x8xf32>
    %231 = arith.mulf %210, %223 : vector<8x8xf32>
    %c0_50 = arith.constant 0 : index
    %c0_51 = arith.constant 0 : index
    %232 = vector.load %arg9[%c0_50, %c0_51] : memref<8x8xf32, #tpu.memory_space<vmem>>, vector<8x8xf32>
    tpu.vector_store %arg9[%c0_50, %c0_51], %231 {strides = array<i32>} : memref<8x8xf32, #tpu.memory_space<vmem>>, vector<8x8xf32>,
    %c0_52 = arith.constant 0 : index
    %c0_53 = arith.constant 0 : index
    %233 = vector.load %arg10[%c0_52, %c0_53] : memref<8x8xf32, #tpu.memory_space<vmem>>, vector<8x8xf32>
    tpu.vector_store %arg10[%c0_52, %c0_53], %230 {strides = array<i32>} : memref<8x8xf32, #tpu.memory_space<vmem>>, vector<8x8xf32>,
    return
  }
  func.func @transform_0(%arg0: i32) -> (i32, i32, i32) {
    %c0_i32 = arith.constant 0 : i32
    %c0_i32_0 = arith.constant 0 : i32
    %c0_i32_1 = arith.constant 0 : i32
    return %arg0, %c0_i32, %c0_i32_0 : i32, i32, i32
  }
  func.func @transform_1(%arg0: i32) -> (i32, i32) {
    %c0_i32 = arith.constant 0 : i32
    %c0_i32_0 = arith.constant 0 : i32
    return %arg0, %c0_i32 : i32, i32
  }
  func.func @transform_2(%arg0: i32) -> (i32, i32, i32) {
    %c0_i32 = arith.constant 0 : i32
    %c0_i32_0 = arith.constant 0 : i32
    %c0_i32_1 = arith.constant 0 : i32
    return %arg0, %c0_i32, %c0_i32_0 : i32, i32, i32
  }
  func.func @transform_3(%arg0: i32) -> (i32, i32) {
    %c0_i32 = arith.constant 0 : i32
    %c0_i32_0 = arith.constant 0 : i32
    %c0_i32_1 = arith.constant 0 : i32
    return %c0_i32, %c0_i32_0 : i32, i32
  }
  func.func @transform_4(%arg0: i32) -> (i32, i32) {
    %c0_i32 = arith.constant 0 : i32
    %c0_i32_0 = arith.constant 0 : i32
    %c0_i32_1 = arith.constant 0 : i32
    return %c0_i32, %c0_i32_0 : i32, i32
  }
  func.func @transform_5(%arg0: i32) -> (i32, i32) {
    %c0_i32 = arith.constant 0 : i32
    %c0_i32_0 = arith.constant 0 : i32
    %c0_i32_1 = arith.constant 0 : i32
    return %c0_i32, %c0_i32_0 : i32, i32
  }
  func.func @transform_6(%arg0: i32) -> (i32, i32) {
    %c0_i32 = arith.constant 0 : i32
    %c0_i32_0 = arith.constant 0 : i32
    %c0_i32_1 = arith.constant 0 : i32
    return %c0_i32, %c0_i32_0 : i32, i32
  }
  func.func @transform_7(%arg0: i32) -> (i32, i32) {
    %c0_i32 = arith.constant 0 : i32
    %c0_i32_0 = arith.constant 0 : i32
    %c0_i32_1 = arith.constant 0 : i32
    return %c0_i32, %c0_i32_0 : i32, i32
  }
  func.func @transform_8(%arg0: i32) -> (i32, i32) {
    %c0_i32 = arith.constant 0 : i32
    %c0_i32_0 = arith.constant 0 : i32
    return %arg0, %c0_i32 : i32, i32
  }
  func.func @transform_9(%arg0: i32) -> (i32, i32) {
    %c0_i32 = arith.constant 0 : i32
    %c0_i32_0 = arith.constant 0 : i32
    return %arg0, %c0_i32 : i32, i32
  }
}

</mosaic_0001>

<bundles_post_ra>
// kernel: tpu_custom_call.1
= control target key start
LH: loop header
LB: loop body
LE: loop exit
PB: predicated region body
PF: predicated region fallthrough
CT: control target
= control target key end

     0   :  { %s3407_s30 = smov 0   ;;  %s4545_s0 = inlined_call_operand.vmem [shape: f32[16,8,32], index: 0, kind: input, shape index: {}]   ;;  %s4546_s1 = inlined_call_operand.vmem [shape: f32[16,16], index: 1, kind: input, shape index: {}]   ;;  %s4547_s2 = inlined_call_operand.vmem [shape: f32[16,8,1], index: 2, kind: input, shape index: {}]   ;;  %s4548_s3 = inlined_call_operand.vmem [shape: f32[16,32], index: 3, kind: input, shape index: {}]   ;;  %s4549_s4 = inlined_call_operand.vmem [shape: f32[32,8], index: 4, kind: input, shape index: {}]   ;;  %s4550_s5 = inlined_call_operand.vmem [shape: f32[32,16], index: 5, kind: input, shape index: {}]   ;;  %s4551_s6 = inlined_call_operand.vmem [shape: f32[16,16], index: 6, kind: input, shape index: {}]   ;;  %s4552_s7 = inlined_call_operand.vmem [shape: f32[11,32], index: 7, kind: input, shape index: {}]   ;;  %s4553_s8 = inlined_call_operand.vmem [shape: f32[16,8], index: 8, kind: output, shape index: {0}]   ;;  %s4554_s9 = inlined_call_operand.vmem [shape: f32[16,8], index: 9, kind: output, shape index: {1}]  }
   0x1 LB: > { %s3027_s10 = sadd.s32 4294967295, %s3349_s30   ;;  %p3031_p0 = scmp.ge.s32.totalorder %s3349_s30, 1  ;;  %s3349_s30 = sphi %s3407_s30, %s20_s30  }
   0x2   : > { %p311_p1 = scmp.lt.s32.totalorder %s3349_s30, 3 }
   0x4   : > { %p312_p2 = pnand %p3031_p0, %p311_p1 }
   0x6   : > { %315 = sbr.rel (%p312_p2) target bundleno = 2479 (0x9af), region = 52 }
   0xd   : > { %v504_v0 = vld [vmem:[%s4549_s4] sm:$0xff]  ;;  %v505_v1 = vld [vmem:[%s4549_s4 + $0x8] sm:$0xff]  ;;  %v3351_v3 = vmov 0.0|0.0   ;;  %vm3352_vm0 = vmmov 0   ;;  %v4555_v6 = vmov 0.0   ;;  %p365_p3 = scmp.lt.s32.totalorder %s3027_s10, 1  ;;  %v4557_v37 = vlaneseq }
   0xe   : > { %v386_v2 = vld [vmem:[%s4548_s3] sm:$0xff]  ;;  %3174 = vmatprep.subr.bf16.mxu0 %v3351_v3  ;;  %v3177_v4 = vpack.c.bf16 %v505_v1, %v504_v0  ;;  %v387_v5 = vld [vmem:[%s4548_s3 + $0x8] sm:$0xff]  ;;  %3115 = vmatprep.mubr.msk.f32.mxu0 %vm3352_vm0, %v4555_v6  ;;  %v506_v7 = vld [vmem:[%s4549_s4 + $0x10] sm:$0xff]  ;;  %s3032_s23 = sshll.u32 %s3027_s10, 3  ;;  %v3354_v11 = vmov 0   ;;  %vm392_vm1 = vcmask 130048  }
   0xf   : > { %v507_v8 = vld [vmem:[%s4549_s4 + $0x18] sm:$0xff]  ;;  %v3175_v9 = vpack.c.bf16 %v387_v5, %v386_v2  ;;  %p360_p4 = scmp.lt.s32.totalorder %s3032_s23, 15  ;;  %s4622_s10 = smov (!%p365_p3, %s3027_s10), 1  ;;  %3218 = vset.pattern.permute.xlu1 %v3354_v11  ;;  %3217 = vset.pattern.permute.xlu0 %v3354_v11  ;;  %vm466_vm2 = vcmask 261120   ;;  %v3501_v39 = vshrl.u32 %v4557_v37, 7  ;;  %v3509_v42 = vld [vmem:[%s4552_s7] sm:$0xff] }
  0x10   : > { %v3181_v10 = vpack.c.bf16 %v507_v8, %v506_v7  ;;  %3178 = vmatprep.subr.bf16.mxu1 %v3177_v4  ;;  %s3435_s24 = sshll.u32 %s4622_s10, 3  ;;  %vm705_vm12 = vcmask 64512  }
  0x11   : > { %3176 = vmatpush3.bf16.msra.mxu0 %v3175_v9  ;;  %3180 = vmatpush3.bf16.msra.mxu1 %v3177_v4  ;;  %s4624_s23 = smov (!%p360_p4, %s3032_s23), 15  ;;  %s368_s27 = scalar_lea.vmem %s4546_s1, %s3435_s24  ;;  %4562 = vst [vmem:[#allocation3_spill] sm:$0xff] %v3501_v39  ;;  %v3504_v40 = vsub.s32 0, %v3501_v39  ;;  %v3512_v43 = vsub.s32 3, %v3501_v39 }
  0x12   : > { %3182 = vmatprep.subr.bf16.mxu1 %v3181_v10  ;;  %v385_v12 = vld [vmem:[%s368_s27] sm:$0xff]  ;;  %s3033_s28 = sshll.u32 %s4624_s23, 3  ;;  %s378_s19 = scalar_lea.vmem %s4553_s8, %s3435_s24 }
  0x13   : > { %s3446_s10 = scalar_lea.vmem %s4545_s0, %s3033_s28  ;;  %s3451_s14 = scalar_lea.vmem %s4547_s2, %s3033_s28  ;;  %v391_v44 = vrot.slane %v3509_v42, %v3504_v40  ;;  %v511_v47 = vrot.slane %v3509_v42, %v3512_v43 }
  0x14   : > { %3116 = vmatmul.mubr.msk.f32.vlgmr.msra.gmra.mrb[0].mxu0 %vm392_vm1, %v385_v12  ;;  %v3454_v13 = vld [vmem:[%s3446_s10] sm:$0xff]  ;;  %v3457_v14 = vld [vmem:[%s3446_s10 + $0x8] sm:$0xff]  ;;  %v3460_v15 = vld [vmem:[%s3446_s10 + $0x10] sm:$0xff]  ;;  %s382_s22 = scalar_lea.vmem %s4554_s9, %s3435_s24 }
  0x15   : > { %3184 = vmatpush3.bf16.msra.mxu1 %v3181_v10  ;;  %3126 = vmatprep.mubr.msk.f32.mxu1 %vm466_vm2, %v3454_v13  ;;  %v642_v16 = vld [vmem:[%s3451_s14 + $0x8] sm:$0xff]  ;;  %v499_v17 = vld [vmem:[%s3446_s10 + $0x18] sm:$0xff]  ;;  %v643_v18 = vld [vmem:[%s3451_s14 + $0x10] sm:$0xff] }
  0x16   : > { %vm650_vm3 = vcmp.eq.f32.partialorder %v642_v16, 0.0  ;;  %v500_v19 = vld [vmem:[%s3446_s10 + $0x20] sm:$0xff]  ;;  %vm651_vm4 = vcmp.eq.f32.partialorder %v643_v18, 0.0  ;;  %v644_v21 = vld [vmem:[%s3451_s14 + $0x18] sm:$0xff]  ;;  %v3479_v24 = vld [vmem:[%s3446_s10 + $0x28] sm:$0xff] }
  0x17   : > { %v658_v20 = vsel %vm650_vm3, 1, %v3354_v11  ;;  %v641_v22 = vld [vmem:[%s3451_s14] sm:$0xff]  ;;  %v659_v23 = vsel %vm651_vm4, 1, %v3354_v11  ;;  %vm652_vm6 = vcmp.eq.f32.partialorder %v644_v21, 0.0  ;;  %v502_v26 = vld [vmem:[%s3446_s10 + $0x30] sm:$0xff]  ;;  %v3489_v29 = vld [vmem:[%s3446_s10 + $0x38] sm:$0xff] }
  0x18   : > { %3127 = vmatmul.mubr.msk.f32.vlgmr.msra.gmra.mrb[0].mxu1 %vm466_vm2, %v3457_v14  ;;  %669 = vperm.xlu1 %3218, %v658_v20   ;;  %vm649_vm5 = vcmp.eq.f32.partialorder %v641_v22, 0.0  ;;  %v645_v27 = vld [vmem:[%s3451_s14 + $0x20] sm:$0xff]  ;;  %v660_v28 = vsel %vm652_vm6, 1, %v3354_v11  ;;  %4561 = vst [vmem:[#allocation2_spill] sm:$0xff] %v3489_v29  ;;  %v646_v30 = vld [vmem:[%s3451_s14 + $0x28] sm:$0xff]  ;;  %v647_v32 = vld [vmem:[%s3451_s14 + $0x30] sm:$0xff] }
  0x19   : > { %3129 = vmatprep.mubr.msk.f32.mxu1 %vm466_vm2, %v3460_v15  ;;  %v657_v25 = vsel %vm649_vm5, 1, %v3354_v11  ;;  %vm653_vm7 = vcmp.eq.f32.partialorder %v645_v27, 0.0  ;;  %vm654_vm8 = vcmp.eq.f32.partialorder %v646_v30, 0.0  ;;  %vm655_vm9 = vcmp.eq.f32.partialorder %v647_v32, 0.0  ;;  %v648_v34 = vld [vmem:[%s3451_s14 + $0x38] sm:$0xff]  ;;  %s3356_s14 = smov 127  }
  0x1a   : > { %666 = vperm.xlu0 %3217, %v657_v25   ;;  %v661_v31 = vsel %vm653_vm7, 1, %v3354_v11  ;;  %v662_v33 = vsel %vm654_vm8, 1, %v3354_v11  ;;  %v663_v35 = vsel %vm655_vm9, 1, %v3354_v11  ;;  %vm656_vm10 = vcmp.eq.f32.partialorder %v648_v34, 0.0 }
  0x1b   : > { %v664_v36 = vsel %vm656_vm10, 1, %v3354_v11  ;;  %vm2387_vm6 = vcmask 1042434   ;;  %vm2389_vm7 = vcmask 1043459   ;;  %vm2391_vm8 = vcmask 1044484  }
  0x1c   : > { %3130 = vmatmul.mubr.msk.f32.gmra.mrb[2].mxu1 %vm466_vm2, %v499_v17  ;;  %672 = vperm.xlu1 %3218, %v659_v23   ;;  %vm2393_vm9 = vcmask 1045509   ;;  %vm2395_vm10 = vcmask 1046534  }
  0x1d   : > { %3132 = vmatprep.mubr.msk.f32.mxu1 %vm466_vm2, %v500_v19 }
  0x20   : > { %3133 = vmatmul.mubr.msk.f32.gmra.mrb[4].mxu1 %vm466_vm2, %v3479_v24  ;;  %675 = vperm.xlu1 %3218, %v660_v28  }
  0x21   : > { %3135 = vmatprep.mubr.msk.f32.mxu1 %vm466_vm2, %v502_v26 }
  0x24   : > { %3136 = vmatmul.mubr.msk.f32.gmra.mrb[6].mxu1 %vm466_vm2, %v3489_v29  ;;  %678 = vperm.xlu1 %3218, %v661_v31  }
  0x28   : > { %681 = vperm.xlu1 %3218, %v662_v33  }
  0x2c   : > { %684 = vperm.xlu1 %3218, %v663_v35  }
  0x30   : > { %687 = vperm.xlu1 %3218, %v664_v36  }
  0x97   : > { %v670_v38 = vpop.permute.xlu1 %669 }
  0x98   : > { %vm690_vm11 = vcmp.eq.s32.totalorder %v670_v38, 1 }
  0x99   : > { %v667_v49 = vpop.permute.xlu0 %666 }
  0x9a   : > { %vm689_vm13 = vcmp.eq.s32.totalorder %v667_v49, 1 }
  0x9b   : > { %v673_v41 = vpop.permute.xlu1 %672 }
  0x9c   : > { %vm691_vm15 = vcmp.eq.s32.totalorder %v673_v41, 1 }
  0x9f   : > { %v676_v45 = vpop.permute.xlu1 %675 }
  0xa0   : > { %vm692_vm14 = vcmp.eq.s32.totalorder %v676_v45, 1 }
  0xa3   : > { %v679_v56 = vpop.permute.xlu1 %678 }
  0xa4   : > { %vm693_vm3 = vcmp.eq.s32.totalorder %v679_v56, 1 }
  0xa7   : > { %v682_v10 = vpop.permute.xlu1 %681 }
  0xa8   : > { %vm694_vm0 = vcmp.eq.s32.totalorder %v682_v10, 1 }
  0xe7   : > { %v462_v46 = vpop.f32.mrb[0].mxu0 }
  0xe8   : > { %v3518_v48 = vadd.f32 %v462_v46, %v391_v44  ;;  %v3117_v50 = vpop.f32.mrb[1].mxu0 }
  0xea   : > { %v467_v51 = vsel %vm466_vm2, %v3518_v48, 0.0 }
  0xeb   : > { %v3128_v52 = vpop.f32.mrb[0].mxu1  ;;  %468 = vadd.xlane.f32.xlu0 %v467_v51 }
  0xec   : > { %v608_v53 = vadd.f32 %v3128_v52, %v511_v47  ;;  %v602_v54 = vpop.f32.mrb[1].mxu1  ;;  %v685_v52 = vpop.permute.xlu1 %684 }
  0xed   : > { %v603_v55 = vadd.f32 %v602_v54, %v511_v47  ;;  %vm695_vm5 = vcmp.eq.s32.totalorder %v685_v52, 1 }
  0xee   : > { %v698_v57 = vsel %vm690_vm11, -1e+30, %v608_v53  ;;  %vm2397_vm11 = vcmask 1047559  }
  0xef   : > { %v713_v58 = vsel %vm705_vm12, %v698_v57, -inf  ;;  %v697_v59 = vsel %vm689_vm13, -1e+30, %v603_v55  ;;  %v3131_v60 = vpop.f32.mrb[2].mxu1 }
  0xf0   : > { %v714_v61 = vrot.slane %v713_v58, 4  ;;  %v706_v62 = vsel %vm705_vm12, %v697_v59, -inf  ;;  %v618_v63 = vadd.f32 %v3131_v60, %v511_v47  ;;  %v612_v0 = vpop.f32.mrb[3].mxu1 }
  0xf1   : > { %v707_v1 = vrot.slane %v706_v62, 4  ;;  %v613_v2 = vadd.f32 %v612_v0, %v511_v47 }
  0xf2   : > { %v715_v3 = vmax.f32 %v713_v58, %v714_v61  ;;  %v700_v4 = vsel %vm692_vm14, -1e+30, %v618_v63  ;;  %v688_v63 = vpop.permute.xlu1 %687 }
  0xf3   : > { %v708_v5 = vmax.f32 %v706_v62, %v707_v1  ;;  %v727_v7 = vsel %vm705_vm12, %v700_v4, -inf  ;;  %v3525_v8 = vsel %vm691_vm15, -1e+30, %v613_v2  ;;  %v3134_v9 = vpop.f32.mrb[4].mxu1  ;;  %vm696_vm4 = vcmp.eq.s32.totalorder %v688_v63, 1 }
  0xf4   : > { %v716_v11 = vrot.slane %v715_v3, 2  ;;  %v728_v12 = vrot.slane %v727_v7, 4  ;;  %v720_v16 = vsel %vm705_vm12, %v3525_v8, -inf  ;;  %v628_v17 = vadd.f32 %v3134_v9, %v511_v47  ;;  %v622_v18 = vpop.f32.mrb[5].mxu1 }
  0xf5   : > { %v709_v19 = vrot.slane %v708_v5, 2  ;;  %v721_v20 = vrot.slane %v720_v16, 4  ;;  %v623_v51 = vadd.f32 %v622_v18, %v511_v47 }
  0xf6   : > { %v717_v21 = vmax.f32 %v715_v3, %v716_v11  ;;  %v729_v22 = vmax.f32 %v727_v7, %v728_v12  ;;  %v3529_v23 = vsel %vm694_vm0, -1e+30, %v628_v17 }
  0xf7   : > { %v710_v25 = vmax.f32 %v708_v5, %v709_v19  ;;  %v3137_v26 = vpop.f32.mrb[6].mxu1  ;;  %v722_v30 = vmax.f32 %v720_v16, %v721_v20  ;;  %v741_v31 = vsel %vm705_vm12, %v3529_v23, -inf  ;;  %v3533_v61 = vsel %vm693_vm3, -1e+30, %v623_v51 }
  0xf8   : > { %v718_v27 = vrot.slane %v717_v21, 1  ;;  %v730_v28 = vrot.slane %v729_v22, 2  ;;  %v632_v32 = vpop.f32.mrb[7].mxu1  ;;  %v638_v34 = vadd.f32 %v3137_v26, %v511_v47  ;;  %v742_v44 = vrot.slane %v741_v31, 4 }
  0xf9   : > { %v711_v33 = vrot.slane %v710_v25, 1  ;;  %v633_v38 = vadd.f32 %v632_v32, %v511_v47  ;;  %v723_v49 = vrot.slane %v722_v30, 2 }
  0xfa   : > { %v719_v35 = vmax.f32 %v717_v21, %v718_v27  ;;  %v731_v36 = vmax.f32 %v729_v22, %v730_v28  ;;  %v743_v55 = vmax.f32 %v741_v31, %v742_v44  ;;  %v3537_v5 = vsel %vm696_vm4, -1e+30, %v638_v34 }
  0xfb   : > { %v712_v41 = vmax.f32 %v710_v25, %v711_v33  ;;  %v724_v60 = vmax.f32 %v722_v30, %v723_v49  ;;  %v3547_v31 = vsel %vm695_vm5, -1e+30, %v633_v38 }
  0xfc   : > { %v763_v45 = vsub.f32 %v698_v57, %v719_v35  ;;  %v732_v46 = vrot.slane %v731_v36, 1  ;;  %v744_v62 = vrot.slane %v743_v55, 2  ;;  %v734_v57 = vsel %vm705_vm12, %v3533_v61, -inf }
  0xfd   : > { %v762_v50 = vsub.f32 %v697_v59, %v712_v41  ;;  %v725_v1 = vrot.slane %v724_v60, 1  ;;  %v735_v59 = vrot.slane %v734_v57, 4  ;;  %v748_v41 = vsel %vm705_vm12, %v3547_v31, -inf }
  0xfe   : > { %v772_v53 = vmul.f32 1.442695, %v763_v45  ;;  %v733_v58 = vmax.f32 %v731_v36, %v732_v46  ;;  %v745_v47 = vmax.f32 %v743_v55, %v744_v62  ;;  %v749_v51 = vrot.slane %v748_v41, 4 }
  0xff   : > { %v770_v54 = vmul.f32 1.442695, %v762_v50  ;;  %v726_v3 = vmax.f32 %v724_v60, %v725_v1  ;;  %v736_v11 = vmax.f32 %v734_v57, %v735_v59  ;;  %v3562_v57 = vsub.s32 1, %v3501_v39 }
 0x100   : > { %3219 = vpow2.f32 %v772_v53  ;;  %v765_v0 = vsub.f32 %v700_v4, %v733_v58  ;;  %v746_v10 = vrot.slane %v745_v47, 1  ;;  %v755_v4 = vsel %vm705_vm12, %v3537_v5, -inf }
 0x101   : > { %3221 = vpow2.f32 %v770_v54  ;;  %v764_v17 = vsub.f32 %v3525_v8, %v726_v3  ;;  %v756_v22 = vrot.slane %v755_v4, 4  ;;  %v737_v27 = vrot.slane %v736_v11, 2 }
 0x102   : > { %v776_v2 = vmul.f32 1.442695, %v765_v0  ;;  %v747_v21 = vmax.f32 %v745_v47, %v746_v10  ;;  %v750_v55 = vmax.f32 %v748_v41, %v749_v51  ;;  %v1021_v6 = vrot.slane %v3454_v13, %v3562_v57 }
 0x103   : > { %v774_v26 = vmul.f32 1.442695, %v764_v17  ;;  %v757_v34 = vmax.f32 %v755_v4, %v756_v22  ;;  %v738_v8 = vmax.f32 %v736_v11, %v737_v27 }
 0x104   : > { %3223 = vpow2.f32 %v776_v2  ;;  %v767_v33 = vsub.f32 %v3529_v23, %v747_v21  ;;  %v751_v0 = vrot.slane %v750_v55, 2 }
 0x105   : > { %3225 = vpow2.f32 %v774_v26  ;;  %v758_v49 = vrot.slane %v757_v34, 2  ;;  %v739_v38 = vrot.slane %v738_v8, 1 }
 0x106   : > { %v780_v46 = vmul.f32 1.442695, %v767_v33  ;;  %v752_v11 = vmax.f32 %v750_v55, %v751_v0 }
 0x107   : > { %v759_v52 = vmax.f32 %v757_v34, %v758_v49  ;;  %v740_v54 = vmax.f32 %v738_v8, %v739_v38 }
 0x108   : > { %v753_v21 = vrot.slane %v752_v11, 1 }
 0x109   : > { %v760_v60 = vrot.slane %v759_v52, 1  ;;  %v766_v63 = vsub.f32 %v3533_v61, %v740_v54 }
 0x10a   : > { %v3220_v56 = vpop.eup %3219  ;;  %v754_v33 = vmax.f32 %v752_v11, %v753_v21 }
 0x10b   : > { %v3539_v7 = vpop.eup %3221  ;;  %v793_v9 = vsel %vm705_vm12, %v3220_v56, 0.0  ;;  %v761_v2 = vmax.f32 %v759_v52, %v760_v60  ;;  %v778_v10 = vmul.f32 1.442695, %v766_v63 }
 0x10c   : > { %v794_v12 = vrot.slane %v793_v9, 4  ;;  %v786_v16 = vsel %vm705_vm12, %v3539_v7, 0.0 }
 0x10d   : > { %v787_v18 = vrot.slane %v786_v16, 4 }
 0x10e   : > { %v795_v19 = vadd.f32 %v794_v12, %v793_v9  ;;  %v3552_v44 = vpop.eup %3223 }
 0x10f   : > { %v788_v20 = vadd.f32 %v787_v18, %v786_v16  ;;  %v807_v23 = vsel %vm705_vm12, %v3552_v44, 0.0  ;;  %v3556_v58 = vpop.eup %3225  ;;  %v3573_v16 = vsub.s32 2, %v3501_v39  ;;  %v3577_v18 = vsub.s32 4, %v3501_v39 }
 0x110   : > { %v796_v25 = vrot.slane %v795_v19, 2  ;;  %v808_v53 = vrot.slane %v807_v23, 4  ;;  %v800_v1 = vsel %vm705_vm12, %v3556_v58, 0.0 }
 0x111   : > { %v789_v28 = vrot.slane %v788_v20, 2  ;;  %v801_v9 = vrot.slane %v800_v1, 4 }
 0x112   : > { %v797_v30 = vadd.f32 %v796_v25, %v795_v19  ;;  %v809_v62 = vadd.f32 %v808_v53, %v807_v23  ;;  %v3606_v53 = vsub.s32 7, %v3501_v39 }
 0x113   : > { %v790_v32 = vadd.f32 %v789_v28, %v788_v20  ;;  %v802_v20 = vadd.f32 %v801_v9, %v800_v1 }
 0x114   : > { %v798_v35 = vrot.slane %v797_v30, 1  ;;  %v810_v3 = vrot.slane %v809_v62, 2 }
 0x115   : > { %v791_v36 = vrot.slane %v790_v32, 1 }
 0x116   : > { %v799_v45 = vadd.f32 %v798_v35, %v797_v30  ;;  %v811_v19 = vadd.f32 %v810_v3, %v809_v62  ;;  %v803_v30 = vrot.slane %v802_v20, 2  ;;  %v3593_v35 = vsub.s32 5, %v3501_v39 }
 0x117   : > { %v792_v50 = vadd.f32 %v791_v36, %v790_v32 }
 0x118   : > { %3227 = vrcp.f32 %v799_v45  ;;  %v812_v28 = vrot.slane %v811_v19, 1  ;;  %v804_v36 = vadd.f32 %v803_v30, %v802_v20  ;;  %v768_v45 = vsub.f32 %v3547_v31, %v754_v33 }
 0x119   : > { %3229 = vpow2.f32 %v780_v46  ;;  %v3597_v46 = vsub.s32 6, %v3501_v39 }
 0x11a   : > { %3231 = vrcp.f32 %v792_v50  ;;  %v813_v8 = vadd.f32 %v812_v28, %v811_v19  ;;  %v805_v51 = vrot.slane %v804_v36, 1  ;;  %v782_v52 = vmul.f32 1.442695, %v768_v45 }
 0x11b   : > { %3233 = vpow2.f32 %v778_v10 }
 0x11c   : > { %v806_v60 = vadd.f32 %v805_v51, %v804_v36 }
 0x122   : > { %v3228_v47 = vpop.eup %3227 }
 0x123   : > { %v3564_v59 = vmul.f32 %v3228_v47, %v3220_v56  ;;  %v3566_v4 = vpop.eup %3229  ;;  %v769_v56 = vsub.f32 %v3537_v5, %v761_v2 }
 0x124   : > { %v3232_v17 = vpop.eup %3231  ;;  %v821_v25 = vsel %vm705_vm12, %v3566_v4, 0.0 }
 0x125   : > { %v972_v61 = vrot.slane %v3564_v59, %v3562_v57  ;;  %v868_v12 = vrot.slane %v3564_v59, %v3504_v40  ;;  %v3580_v22 = vmul.f32 %v3232_v17, %v3539_v7  ;;  %v1180_v26 = vrot.slane %v3564_v59, %v3512_v43  ;;  %v3603_v38 = vpop.eup %3233 }
 0x126   : > { %v1076_v5 = vrot.slane %v3564_v59, %v3573_v16  ;;  %v784_v27 = vmul.f32 1.442695, %v769_v56  ;;  %v822_v32 = vrot.slane %v821_v25, 4  ;;  %v1284_v7 = vrot.slane %v3564_v59, %v3577_v18 }
 0x127   : > { %974 = vbcast.lane.b32.xlu1 %v972_v61, 256  ;;  %870 = vbcast.lane.b32.xlu0 %v868_v12, 256  ;;  %v861_v34 = vrot.slane %v3580_v22, %v3504_v40  ;;  %v1388_v49 = vrot.slane %v3564_v59, %v3593_v35  ;;  %v965_v50 = vrot.slane %v3580_v22, %v3562_v57  ;;  %v814_v31 = vsel %vm705_vm12, %v3603_v38, 0.0 }
 0x128   : > { %3235 = vpow2.f32 %v784_v27  ;;  %v823_v41 = vadd.f32 %v822_v32, %v821_v25  ;;  %v1492_v54 = vrot.slane %v3564_v59, %v3597_v46  ;;  %v1069_v55 = vrot.slane %v3580_v22, %v3573_v16 }
 0x129   : > { %3237 = vrcp.f32 %v813_v8  ;;  %v815_v63 = vrot.slane %v814_v31, 4  ;;  %v1596_v1 = vrot.slane %v3564_v59, %v3606_v53  ;;  %v1173_v47 = vrot.slane %v3580_v22, %v3512_v43 }
 0x12a   : > { %v824_v23 = vrot.slane %v823_v41, 2  ;;  %3239 = vpow2.f32 %v782_v52  ;;  %v1277_v10 = vrot.slane %v3580_v22, %v3577_v18  ;;  %v1485_v11 = vrot.slane %v3580_v22, %v3597_v46 }
 0x12b   : > { %1182 = vbcast.lane.b32.xlu1 %v1180_v26, 256  ;;  %1078 = vbcast.lane.b32.xlu0 %v1076_v5, 256  ;;  %3241 = vrcp.f32 %v806_v60  ;;  %v816_v3 = vadd.f32 %v815_v63, %v814_v31  ;;  %v1381_v19 = vrot.slane %v3580_v22, %v3593_v35  ;;  %v1589_v20 = vrot.slane %v3580_v22, %v3606_v53 }
 0x12c   : > { %v825_v62 = vadd.f32 %v824_v23, %v823_v41 }
 0x12d   : > { %v817_v12 = vrot.slane %v816_v3, 2 }
 0x12e   : > { %v826_v2 = vrot.slane %v825_v62, 1 }
 0x12f   : > { %1286 = vbcast.lane.b32.xlu1 %v1284_v7, 256  ;;  %863 = vbcast.lane.b32.xlu0 %v861_v34, 256  ;;  %v818_v25 = vadd.f32 %v817_v12, %v816_v3 }
 0x130   : > { %v827_v59 = vadd.f32 %v826_v2, %v825_v62 }
 0x131   : > { %v819_v22 = vrot.slane %v818_v25, 1 }
 0x132   : > { %v3614_v0 = vpop.eup %3235  ;;  %3243 = vrcp.f32 %v827_v59 }
 0x133   : > { %1390 = vbcast.lane.b32.xlu1 %v1388_v49, 256  ;;  %967 = vbcast.lane.b32.xlu0 %v965_v50, 256  ;;  %v835_v9 = vsel %vm705_vm12, %v3614_v0, 0.0  ;;  %v3238_v61 = vpop.eup %3237  ;;  %v820_v8 = vadd.f32 %v819_v22, %v818_v25 }
 0x134   : > { %v836_v17 = vrot.slane %v835_v9, 4  ;;  %v3627_v56 = vmul.f32 %v3238_v61, %v3552_v44  ;;  %v3633_v21 = vpop.eup %3239 }
 0x135   : > { %v828_v5 = vsel %vm705_vm12, %v3633_v21, 0.0  ;;  %v3242_v28 = vpop.eup %3241  ;;  %3245 = vrcp.f32 %v820_v8 }
 0x136   : > { %v837_v26 = vadd.f32 %v836_v17, %v835_v9  ;;  %v882_v44 = vrot.slane %v3627_v56, %v3504_v40  ;;  %v986_v27 = vrot.slane %v3627_v56, %v3562_v57  ;;  %v829_v32 = vrot.slane %v828_v5, 4 }
 0x137   : > { %1494 = vbcast.lane.b32.xlu1 %v1492_v54, 256  ;;  %1071 = vbcast.lane.b32.xlu0 %v1069_v55, 256  ;;  %v3642_v33 = vmul.f32 %v3242_v28, %v3556_v58  ;;  %v1506_v7 = vrot.slane %v3627_v56, %v3597_v46  ;;  %v1090_v34 = vrot.slane %v3627_v56, %v3573_v16 }
 0x138   : > { %v838_v30 = vrot.slane %v837_v26, 2  ;;  %v830_v41 = vadd.f32 %v829_v32, %v828_v5  ;;  %v1194_v49 = vrot.slane %v3627_v56, %v3512_v43  ;;  %v1298_v31 = vrot.slane %v3627_v56, %v3577_v18 }
 0x139   : > { %v1291_v45 = vrot.slane %v3642_v33, %v3577_v18  ;;  %v1395_v52 = vrot.slane %v3642_v33, %v3593_v35  ;;  %v1402_v62 = vrot.slane %v3627_v56, %v3593_v35  ;;  %v1083_v61 = vrot.slane %v3642_v33, %v3573_v16 }
 0x13a   : > { %v839_v36 = vadd.f32 %v838_v30, %v837_v26  ;;  %v831_v51 = vrot.slane %v830_v41, 2  ;;  %v1187_v17 = vrot.slane %v3642_v33, %v3512_v43 }
 0x13b   : > { %1598 = vbcast.lane.b32.xlu1 %v1596_v1, 256  ;;  %1175 = vbcast.lane.b32.xlu0 %v1173_v47, 256  ;;  %v875_v1 = vrot.slane %v3642_v33, %v3504_v40 }
 0x13c   : > { %v3244_v50 = vpop.eup %3243  ;;  %v840_v58 = vrot.slane %v839_v36, 1  ;;  %v832_v55 = vadd.f32 %v831_v51, %v830_v41 }
 0x13d   : > { %v3653_v23 = vmul.f32 %v3244_v50, %v3566_v4 }
 0x13e   : > { %v841_v54 = vadd.f32 %v840_v58, %v839_v36  ;;  %v833_v4 = vrot.slane %v832_v55, 1 }
 0x13f   : > { %1279 = vbcast.lane.b32.xlu1 %v1277_v10, 256  ;;  %1487 = vbcast.lane.b32.xlu0 %v1485_v11, 256  ;;  %v1000_v60 = vrot.slane %v3653_v23, %v3562_v57  ;;  %v1104_v63 = vrot.slane %v3653_v23, %v3573_v16  ;;  %v3246_v47 = vpop.eup %3245  ;;  %v1208_v9 = vrot.slane %v3653_v23, %v3512_v43 }
 0x140   : > { %3247 = vrcp.f32 %v841_v54  ;;  %v834_v2 = vadd.f32 %v833_v4, %v832_v55  ;;  %v3668_v3 = vmul.f32 %v3246_v47, %v3603_v38  ;;  %v979_v10 = vrot.slane %v3642_v33, %v3562_v57 }
 0x141   : > { %v896_v5 = vrot.slane %v3653_v23, %v3504_v40  ;;  %v1416_v50 = vrot.slane %v3653_v23, %v3593_v35 }
 0x142   : > { %3249 = vrcp.f32 %v834_v2  ;;  %v993_v11 = vrot.slane %v3668_v3, %v3562_v57  ;;  %v1305_v12 = vrot.slane %v3668_v3, %v3577_v18  ;;  %v889_v28 = vrot.slane %v3668_v3, %v3504_v40 }
 0x143   : > { %1383 = vbcast.lane.b32.xlu1 %v1381_v19, 256  ;;  %1591 = vbcast.lane.b32.xlu0 %v1589_v20, 256  ;;  %v1499_v20 = vrot.slane %v3642_v33, %v3597_v46  ;;  %v1201_v22 = vrot.slane %v3668_v3, %v3512_v43  ;;  %v1409_v47 = vrot.slane %v3668_v3, %v3593_v35 }
 0x147   : > { %884 = vbcast.lane.b32.xlu1 %v882_v44, 256  ;;  %988 = vbcast.lane.b32.xlu0 %v986_v27, 256  ;;  %v1312_v27 = vrot.slane %v3653_v23, %v3577_v18 }
 0x14a   : > { %v3248_v59 = vpop.eup %3247 }
 0x14b   : > { %1508 = vbcast.lane.b32.xlu1 %v1506_v7, 256  ;;  %1092 = vbcast.lane.b32.xlu0 %v1090_v34, 256  ;;  %v3679_v38 = vmul.f32 %v3248_v59, %v3614_v0 }
 0x14c   : > { %v3250_v25 = vpop.eup %3249 }
 0x14d   : > { %v910_v19 = vrot.slane %v3679_v38, %v3504_v40  ;;  %v855_v0 = vmul.f32 %v3250_v25, %v3633_v21  ;;  %v1118_v26 = vrot.slane %v3679_v38, %v3573_v16  ;;  %v1097_v21 = vrot.slane %v3668_v3, %v3573_v16 }
 0x14e   : > { %v1014_v30 = vrot.slane %v3679_v38, %v3562_v57  ;;  %v1326_v54 = vrot.slane %v3679_v38, %v3577_v18 }
 0x14f   : > { %1293 = vbcast.lane.b32.xlu1 %v1291_v45, 256  ;;  %1196 = vbcast.lane.b32.xlu0 %v1194_v49, 256  ;;  %v1007_v44 = vrot.slane %v855_v0, %v3562_v57  ;;  %v903_v32 = vrot.slane %v855_v0, %v3504_v40  ;;  %v1111_v34 = vrot.slane %v855_v0, %v3573_v16 }
 0x150   : > { %v1215_v36 = vrot.slane %v855_v0, %v3512_v43  ;;  %v1603_v45 = vrot.slane %v3642_v33, %v3606_v53 }
 0x153   : > { %1397 = vbcast.lane.b32.xlu1 %v1395_v52, 256  ;;  %1300 = vbcast.lane.b32.xlu0 %v1298_v31, 256 }
 0x157   : > { %1002 = vbcast.lane.b32.xlu1 %v1000_v60, 256  ;;  %1404 = vbcast.lane.b32.xlu0 %v1402_v62, 256  ;;  %v1423_v62 = vrot.slane %v855_v0, %v3593_v35 }
 0x15b   : > { %1106 = vbcast.lane.b32.xlu1 %v1104_v63, 256  ;;  %877 = vbcast.lane.b32.xlu0 %v875_v1, 256  ;;  %v1430_v1 = vrot.slane %v3679_v38, %v3593_v35 }
 0x15f   : > { %1210 = vbcast.lane.b32.xlu1 %v1208_v9, 256  ;;  %981 = vbcast.lane.b32.xlu0 %v979_v10, 256  ;;  %v1527_v10 = vrot.slane %v855_v0, %v3597_v46 }
 0x163   : > { %995 = vbcast.lane.b32.xlu1 %v993_v11, 256  ;;  %1085 = vbcast.lane.b32.xlu0 %v1083_v61, 256  ;;  %v1222_v11 = vrot.slane %v3679_v38, %v3512_v43 }
 0x167   : > { %1307 = vbcast.lane.b32.xlu1 %v1305_v12, 256  ;;  %1189 = vbcast.lane.b32.xlu0 %v1187_v17, 256  ;;  %v1631_v12 = vrot.slane %v855_v0, %v3606_v53  ;;  %v1610_v17 = vrot.slane %v3627_v56, %v3606_v53  ;;  %v1617_v56 = vrot.slane %v3668_v3, %v3606_v53 }
 0x16b   : > { %912 = vbcast.lane.b32.xlu1 %v910_v19, 256  ;;  %1501 = vbcast.lane.b32.xlu0 %v1499_v20, 256  ;;  %v1513_v20 = vrot.slane %v3668_v3, %v3597_v46  ;;  %v1638_v3 = vrot.slane %v3679_v38, %v3606_v53 }
 0x16f   : > { %1120 = vbcast.lane.b32.xlu1 %v1118_v26, 256  ;;  %898 = vbcast.lane.b32.xlu0 %v896_v5, 256  ;;  %v1520_v5 = vrot.slane %v3653_v23, %v3597_v46 }
 0x173   : > { %1009 = vbcast.lane.b32.xlu1 %v1007_v44, 256  ;;  %1314 = vbcast.lane.b32.xlu0 %v1312_v27, 256 }
 0x177   : > { %891 = vbcast.lane.b32.xlu0 %v889_v28, 256  ;;  %v1624_v28 = vrot.slane %v3653_v23, %v3606_v53 }
 0x178   : > { %v469_v7 = vpop.xlane.xlu0 %468 }
 0x179   : > { %v471_v8 = vmul.f32 0.03125, %v469_v7 }
 0x17b   : > { %1099 = vbcast.lane.b32.xlu0 %v1097_v21, 256  ;;  %v3709_v41 = vsub.f32 %v3518_v48, %v471_v8  ;;  %v1319_v48 = vrot.slane %v855_v0, %v3577_v18 }
 0x17d   : > { %v473_v49 = vmul.f32 %v3709_v41, %v3709_v41 }
 0x17f   : > { %1203 = vbcast.lane.b32.xlu0 %v1201_v22, 256  ;;  %v474_v58 = vsel %vm466_vm2, %v473_v49, 0.0 }
 0x183   : > { %1016 = vbcast.lane.b32.xlu0 %v1014_v30, 256  ;;  %v1534_v30 = vrot.slane %v3679_v38, %v3597_v46 }
 0x187   : > { %905 = vbcast.lane.b32.xlu0 %v903_v32, 256 }
 0x18b   : > { %1113 = vbcast.lane.b32.xlu0 %v1111_v34, 256 }
 0x18f   : > { %1217 = vbcast.lane.b32.xlu0 %v1215_v36, 256  ;;  %v1029_v36 = vrot.slane %v3460_v15, %v3562_v57 }
 0x193   : > { %1605 = vbcast.lane.b32.xlu0 %v1603_v45, 256 }
 0x197   : > { %475 = vadd.xlane.f32.xlu1 %v474_v58  ;;  %1418 = vbcast.lane.b32.xlu0 %v1416_v50, 256  ;;  %v925_v50 = vrot.slane %v3460_v15, %v3504_v40  ;;  %v1133_v58 = vrot.slane %v3460_v15, %v3573_v16 }
 0x199   : > { %v3718_v51 = vpop.permute.xlu1 %974  ;;  %v3720_v52 = vpop.permute.xlu0 %870 }
 0x19b   : > { %1321 = vbcast.lane.b32.xlu0 %v1319_v48, 256 }
 0x19d   : > { %v3723_v31 = vpop.permute.xlu1 %1182  ;;  %v3725_v33 = vpop.permute.xlu0 %1078 }
 0x19f   : > { %1328 = vbcast.lane.b32.xlu0 %v1326_v54, 256 }
 0x1a1   : > { %v3729_v55 = vpop.permute.xlu1 %1286  ;;  %v3731_v60 = vpop.permute.xlu0 %863 }
 0x1a3   : > { %1425 = vbcast.lane.b32.xlu0 %v1423_v62, 256 }
 0x1a5   : > { %v3734_v4 = vpop.permute.xlu1 %1390  ;;  %v3736_v63 = vpop.permute.xlu0 %967 }
 0x1a7   : > { %1432 = vbcast.lane.b32.xlu0 %v1430_v1, 256  ;;  %v1237_v1 = vrot.slane %v3460_v15, %v3512_v43 }
 0x1a8   : > { %1411 = vbcast.lane.b32.xlu1 %v1409_v47, 256 }
 0x1a9   : > { %v3742_v2 = vpop.permute.xlu1 %1494  ;;  %v3744_v9 = vpop.permute.xlu0 %1071 }
 0x1ab   : > { %1529 = vbcast.lane.b32.xlu0 %v1527_v10, 256  ;;  %v1788_v10 = vld [vmem:[%s4550_s5] sm:$0xff] }
 0x1ac   : > { %1224 = vbcast.lane.b32.xlu1 %v1222_v11, 256  ;;  %v1789_v11 = vld [vmem:[%s4550_s5 + $0x8] sm:$0xff] }
 0x1ad   : > { %v3749_v61 = vpop.permute.xlu1 %1598  ;;  %v3751_v59 = vpop.permute.xlu0 %1175 }
 0x1af   : > { %1633 = vbcast.lane.b32.xlu0 %v1631_v12, 256  ;;  %v1341_v12 = vrot.slane %v3460_v15, %v3577_v18 }
 0x1b0   : > { %1612 = vbcast.lane.b32.xlu1 %v1610_v17, 256 }
 0x1b1   : > { %v3756_v19 = vpop.permute.xlu0 %1487  ;;  %v3760_v25 = vpop.permute.xlu1 %1279 }
 0x1b4   : > { %1515 = vbcast.lane.b32.xlu1 %v1513_v20, 256  ;;  %v3185_v20 = vpack.c.bf16 %v1789_v11, %v1788_v10  ;;  %v937_v11 = vrot.slane %v3479_v24, %v3504_v40 }
 0x1b5   : > { %v3762_v26 = vpop.permute.xlu0 %1591  ;;  %v3766_v0 = vpop.permute.xlu1 %1383 }
 0x1b6   : > { %3186 = vmatprep.subr.bf16.mxu0 %v3185_v20 }
 0x1b7   : > { %3188 = vmatpush3.bf16.msra.mxu0 %v3185_v20 }
 0x1b8   : > { %1522 = vbcast.lane.b32.xlu1 %v1520_v5, 256  ;;  %v1790_v5 = vld [vmem:[%s4550_s5 + $0x10] sm:$0xff] }
 0x1b9   : > { %v3768_v44 = vpop.permute.xlu0 %988  ;;  %v3776_v21 = vpop.permute.xlu1 %884 }
 0x1bc   : > { %1619 = vbcast.lane.b32.xlu1 %v1617_v56, 256  ;;  %v1791_v56 = vld [vmem:[%s4550_s5 + $0x18] sm:$0xff] }
 0x1bd   : > { %v3772_v27 = vpop.permute.xlu0 %1092  ;;  %v3782_v32 = vpop.permute.xlu1 %1508 }
 0x1c0   : > { %1626 = vbcast.lane.b32.xlu1 %v1624_v28, 256 }
 0x1c1   : > { %v3778_v22 = vpop.permute.xlu0 %1196  ;;  %v1294_v23 = vpop.permute.xlu1 %1293 }
 0x1c4   : > { %1536 = vbcast.lane.b32.xlu1 %v1534_v30, 256  ;;  %v3189_v30 = vpack.c.bf16 %v1791_v56, %v1790_v5 }
 0x1c5   : > { %v3784_v7 = vpop.permute.xlu0 %1300  ;;  %v1398_v45 = vpop.permute.xlu1 %1397 }
 0x1c6   : > { %3190 = vmatprep.subr.bf16.mxu0 %v3189_v30 }
 0x1c7   : > { %3192 = vmatpush3.bf16.msra.mxu0 %v3189_v30 }
 0x1c8   : > { %1640 = vbcast.lane.b32.xlu1 %v1638_v3, 256  ;;  %v1445_v3 = vrot.slane %v3460_v15, %v3593_v35  ;;  %v1145_v15 = vrot.slane %v3479_v24, %v3573_v16 }
 0x1c9   : > { %v3788_v34 = vpop.permute.xlu0 %1404  ;;  %v1003_v47 = vpop.permute.xlu1 %1002 }
 0x1cd   : > { %v878_v8 = vpop.permute.xlu0 %877 }
 0x1ce   : > { %v948_v62 = vmul.f32 %v925_v50, %v878_v8 }
 0x1d1   : > { %v982_v49 = vpop.permute.xlu0 %981 }
 0x1d2   : > { %v1052_v48 = vmul.f32 %v1029_v36, %v982_v49  ;;  %v1364_v49 = vmul.f32 %v1341_v12, %v1294_v23  ;;  %v1249_v12 = vrot.slane %v3479_v24, %v3512_v43 }
 0x1d4   : > { %v1060_v17 = vadd.f32 %v1052_v48, %v948_v62  ;;  %v1041_v62 = vrot.slane %v3479_v24, %v3562_v57 }
 0x1d5   : > { %v1086_v54 = vpop.permute.xlu0 %1085 }
 0x1d6   : > { %v1156_v38 = vmul.f32 %v1133_v58, %v1086_v54  ;;  %v1107_v58 = vpop.permute.xlu1 %1106  ;;  %v1468_v54 = vmul.f32 %v1445_v3, %v1398_v45 }
 0x1d7   : > { %v1159_v20 = vmul.f32 %v1145_v15, %v1107_v58 }
 0x1d8   : > { %v1164_v8 = vadd.f32 %v1156_v38, %v1060_v17 }
 0x1d9   : > { %v1190_v28 = vpop.permute.xlu0 %1189 }
 0x1da   : > { %v1260_v36 = vmul.f32 %v1237_v1, %v1190_v28  ;;  %v1055_v1 = vmul.f32 %v1041_v62, %v1003_v47  ;;  %v1211_v45 = vpop.permute.xlu1 %1210 }
 0x1db   : > { %v1263_v56 = vmul.f32 %v1249_v12, %v1211_v45  ;;  %v1025_v12 = vrot.slane %v3457_v14, %v3562_v57 }
 0x1dc   : > { %v1268_v50 = vadd.f32 %v1260_v36, %v1164_v8 }
 0x1dd   : > { %v3814_v48 = vpop.permute.xlu0 %1501  ;;  %v1051_v37 = vmul.f32 %v1025_v12, %v3718_v51 }
 0x1de   : > { %4563 = vst [vmem:[#allocation4_spill] sm:$0xff] %v3814_v48  ;;  %v1372_v10 = vadd.f32 %v1364_v49, %v1268_v50  ;;  %v3834_v49 = vpop.permute.xlu1 %995  ;;  %v3900_v48 = vld [vmem:[%s3446_s10 + $0x18] sm:$0xff] }
 0x1e0   : > { %v3822_v38 = vadd.f32 %v1468_v54, %v1372_v10 }
 0x1e1   : > { %v899_v23 = vpop.permute.xlu0 %898 }
 0x1e2   : > { %4564 = vst [vmem:[#allocation5_spill] sm:$0xff] %v3822_v38  ;;  %v951_v17 = vmul.f32 %v937_v11, %v899_v23  ;;  %v3838_v50 = vpop.permute.xlu1 %1307  ;;  %v1125_v38 = vrot.slane %v3454_v13, %v3573_v16 }
 0x1e3   : > { %4568 = vst [vmem:[#allocation9_spill] sm:$0xff] %v3838_v50 }
 0x1e4   : > { %v1063_v5 = vadd.f32 %v1055_v1, %v951_v17  ;;  %v921_v17 = vrot.slane %v3457_v14, %v3504_v40  ;;  %v1154_v50 = vmul.f32 %v1125_v38, %v3744_v9 }
 0x1e5   : > { %v3828_v8 = vpop.permute.xlu0 %1314 }
 0x1e6   : > { %v1167_v28 = vadd.f32 %v1159_v20, %v1063_v5  ;;  %4566 = vst [vmem:[#allocation7_spill] sm:$0xff] %v3828_v8  ;;  %v3842_v58 = vpop.permute.xlu1 %912  ;;  %v1129_v5 = vrot.slane %v3457_v14, %v3573_v16  ;;  %v3883_v8 = vld [vmem:[%s3446_s10] sm:$0xff] }
 0x1e7   : > { %4570 = vst [vmem:[#allocation11_spill] sm:$0xff] %v3842_v58  ;;  %v1229_v51 = vrot.slane %v3883_v8, %v3512_v43 }
 0x1e8   : > { %v3826_v3 = vadd.f32 %v1263_v56, %v1167_v28  ;;  %v1233_v28 = vrot.slane %v3457_v14, %v3512_v43  ;;  %v1155_v12 = vmul.f32 %v1129_v5, %v3725_v33  ;;  %v929_v33 = vrot.slane %v3900_v48, %v3504_v40 }
 0x1e9   : > { %v3830_v30 = vpop.permute.xlu0 %891  ;;  %v1033_v5 = vrot.slane %v3900_v48, %v3562_v57 }
 0x1ea   : > { %4565 = vst [vmem:[#allocation6_spill] sm:$0xff] %v3826_v3  ;;  %v3846_v62 = vpop.permute.xlu1 %1120  ;;  %v1259_v39 = vmul.f32 %v1233_v28, %v3723_v31  ;;  %v489_v31 = vrot.slane %v3509_v42, %v3573_v16 }
 0x1eb   : > { %4572 = vst [vmem:[#allocation13_spill] sm:$0xff] %v3846_v62 }
 0x1ed   : > { %v3832_v36 = vpop.permute.xlu0 %1099 }
 0x1ee   : > { %v3850_v11 = vpop.permute.xlu1 %1009 }
 0x1ef   : > { %4574 = vst [vmem:[#allocation15_spill] sm:$0xff] %v3850_v11 }
 0x1f1   : > { %v3836_v47 = vpop.permute.xlu0 %1203 }
 0x1f2   : > { %4567 = vst [vmem:[#allocation8_spill] sm:$0xff] %v3836_v47 }
 0x1f5   : > { %v3840_v24 = vpop.permute.xlu0 %1016 }
 0x1f6   : > { %4569 = vst [vmem:[#allocation10_spill] sm:$0xff] %v3840_v24 }
 0x1f9   : > { %v3844_v54 = vpop.permute.xlu0 %905 }
 0x1fa   : > { %4571 = vst [vmem:[#allocation12_spill] sm:$0xff] %v3844_v54  ;;  %v949_v54 = vmul.f32 %v929_v33, %v3776_v21 }
 0x1fd   : > { %v3848_v10 = vpop.permute.xlu0 %1113 }
 0x1fe   : > { %4573 = vst [vmem:[#allocation14_spill] sm:$0xff] %v3848_v10  ;;  %v3921_v10 = vld [vmem:[%s3446_s10 + $0x20] sm:$0xff] }
 0x201   : > { %v3852_v15 = vpop.permute.xlu0 %1217 }
 0x202   : > { %4575 = vst [vmem:[#allocation16_spill] sm:$0xff] %v3852_v15  ;;  %v1137_v15 = vrot.slane %v3900_v48, %v3573_v16 }
 0x205   : > { %v3862_v56 = vpop.permute.xlu0 %1605 }
 0x206   : > { %4577 = vst [vmem:[#allocation18_spill] sm:$0xff] %v3862_v56  ;;  %v1050_v56 = vmul.f32 %v1021_v6, %v3736_v63  ;;  %v1241_v6 = vrot.slane %v3900_v48, %v3512_v43 }
 0x209   : > { %v3912_v63 = vpop.permute.xlu0 %1418 }
 0x20a   : > { %4579 = vst [vmem:[#allocation20_spill] sm:$0xff] %v3912_v63  ;;  %v3931_v63 = vld [vmem:[%s3446_s10 + $0x10] sm:$0xff] }
 0x20d   : > { %v3962_v24 = vpop.permute.xlu0 %1321 }
 0x224   : > { %v476_v23 = vpop.xlane.xlu1 %475 }
 0x225   : > { %v477_v1 = vmul.f32 0.03125, %v476_v23  ;;  %v1337_v23 = vrot.slane %v3457_v14, %v3577_v18 }
 0x227   : > { %v478_v45 = vadd.f32 1e-05, %v477_v1  ;;  %v947_v1 = vmul.f32 %v921_v17, %v3720_v52  ;;  %v1333_v17 = vrot.slane %v3883_v8, %v3577_v18 }
 0x228   : > { %v3858_v20 = vpop.permute.xlu1 %1411 }
 0x229   : > { %4576 = vst [vmem:[#allocation17_spill] sm:$0xff] %v3858_v20  ;;  %3251 = vrsqrt.f32 %v478_v45  ;;  %v917_v20 = vrot.slane %v3454_v13, %v3504_v40  ;;  %v1441_v45 = vrot.slane %v3457_v14, %v3593_v35  ;;  %v1437_v13 = vrot.slane %v3883_v8, %v3593_v35 }
 0x22b   : > { %v946_v62 = vmul.f32 %v917_v20, %v3731_v60  ;;  %v1258_v20 = vmul.f32 %v1229_v51, %v3751_v59  ;;  %v3941_v60 = vld [vmem:[%s3446_s10 + $0x38] sm:$0xff]  ;;  %v3951_v51 = vld [vmem:[%s3446_s10 + $0x28] sm:$0xff]  ;;  %v1053_v59 = vmul.f32 %v1033_v5, %v3768_v44  ;;  %v1467_v44 = vmul.f32 %v1441_v45, %v3734_v4 }
 0x22c   : > { %v3887_v52 = vpop.permute.xlu1 %1224 }
 0x22d   : > { %4578 = vst [vmem:[#allocation19_spill] sm:$0xff] %v3887_v52  ;;  %v1059_v52 = vadd.f32 %v1051_v37, %v947_v1  ;;  %v1345_v37 = vrot.slane %v3900_v48, %v3577_v18  ;;  %v1449_v1 = vrot.slane %v3900_v48, %v3593_v35  ;;  %v1058_v38 = vadd.f32 %v1050_v56, %v946_v62  ;;  %v3946_v56 = vld [vmem:[%s3446_s10 + $0x30] sm:$0xff] }
 0x22e   : > { %v1363_v62 = vmul.f32 %v1337_v23, %v3729_v55  ;;  %v1049_v55 = vrot.slane %v3941_v60, %v3562_v57  ;;  %v1261_v23 = vmul.f32 %v1241_v6, %v3778_v22  ;;  %v1653_v22 = vrot.slane %v3931_v63, %v3606_v53 }
 0x22f   : > { %v1163_v3 = vadd.f32 %v1155_v12, %v1059_v52  ;;  %v484_v12 = vrot.slane %v3509_v42, %v3562_v57  ;;  %v1162_v9 = vadd.f32 %v1154_v50, %v1058_v38  ;;  %v1466_v52 = vmul.f32 %v1437_v13, %v3766_v0 }
 0x230   : > { %v3937_v58 = vpop.permute.xlu1 %1612  ;;  %v1157_v42 = vmul.f32 %v1137_v15, %v3772_v27  ;;  %v941_v0 = vrot.slane %v3946_v56, %v3504_v40  ;;  %v1061_v15 = vadd.f32 %v1053_v59, %v949_v54  ;;  %v4581_v13 = vrot.slane %v3457_v14, %v3597_v46  ;;  %v3994_v54 = vpop.permute.xlu0 %1328 }
 0x231   : > { %4580 = vst [vmem:[#allocation21_spill] sm:$0xff] %v3937_v58  ;;  %v1362_v58 = vmul.f32 %v1333_v17, %v3760_v25  ;;  %v1267_v29 = vadd.f32 %v1259_v39, %v1163_v3  ;;  %v1266_v47 = vadd.f32 %v1258_v20, %v1162_v9  ;;  %v933_v25 = vrot.slane %v3921_v10, %v3504_v40 }
 0x232   : > { %v1141_v39 = vrot.slane %v3921_v10, %v3573_v16  ;;  %v1149_v17 = vrot.slane %v3946_v56, %v3573_v16  ;;  %v1571_v4 = vmul.f32 %v4581_v13, %v3742_v2  ;;  %v1165_v45 = vadd.f32 %v1157_v42, %v1061_v15 }
 0x233   : > { %v3252_v11 = vpop.eup %3251  ;;  %v1370_v21 = vadd.f32 %v1362_v58, %v1266_v47  ;;  %v1371_v27 = vadd.f32 %v1363_v62, %v1267_v29  ;;  %v1365_v33 = vmul.f32 %v1345_v37, %v3784_v7  ;;  %v1253_v29 = vrot.slane %v3946_v56, %v3512_v43 }
 0x234   : > { %v480_v28 = vmul.f32 %v3252_v11, %v3709_v41  ;;  %v1245_v41 = vrot.slane %v3921_v10, %v3512_v43  ;;  %v3979_v11 = vpop.permute.xlu1 %1515  ;;  %v4582_v6 = vrot.slane %v3457_v14, %v3606_v53  ;;  %v4583_v9 = vrot.slane %v3883_v8, %v3597_v46 }
 0x235   : > { %v1474_v47 = vadd.f32 %v1466_v52, %v1370_v21  ;;  %v1475_v5 = vadd.f32 %v1467_v44, %v1371_v27  ;;  %v1269_v7 = vadd.f32 %v1261_v23, %v1165_v45  ;;  %v1469_v37 = vmul.f32 %v1449_v1, %v3788_v34  ;;  %v1426_v23 = vpop.permute.xlu0 %1425 }
 0x236   : > { %v485_v50 = vmul.f32 %v484_v12, %v480_v28  ;;  %v1675_v2 = vmul.f32 %v4582_v6, %v3749_v61  ;;  %v1570_v38 = vmul.f32 %v4583_v9, %v3756_v19  ;;  %v1457_v20 = vrot.slane %v3951_v51, %v3593_v35  ;;  %v4587_v9 = vld [vmem:[#allocation8_spill] sm:$0xff] }
 0x237   : > { %v3355_v52 = vmov 1966171168   ;;  %v1579_v62 = vadd.f32 %v1571_v4, %v1475_v5  ;;  %v1357_v14 = vrot.slane %v3946_v56, %v3577_v18  ;;  %v1361_v61 = vrot.slane %v3941_v60, %v3577_v18 }
 0x238   : > { %v3977_v3 = vadd.f32 %v489_v31, %v485_v50  ;;  %v1693_v12 = vunpack.c.l.s4 %v3355_v52  ;;  %v1578_v59 = vadd.f32 %v1570_v38, %v1474_v47  ;;  %v4011_v31 = vpop.permute.xlu1 %1522  ;;  %v1373_v19 = vadd.f32 %v1365_v33, %v1269_v7  ;;  %v4589_v7 = vld [vmem:[#allocation12_spill] sm:$0xff] }
 0x239   : > { %v1461_v28 = vrot.slane %v3946_v56, %v3593_v35  ;;  %v4019_v50 = vadd.f32 %v1675_v2, %v1579_v62  ;;  %v4584_v42 = vrot.slane %v3883_v8, %v3606_v53  ;;  %v950_v21 = vmul.f32 %v933_v25, %v3830_v30 }
 0x23a   : > { %v492_v58 = vmul.f32 0.70710677, %v3977_v3  ;;  %v1477_v15 = vadd.f32 %v1469_v37, %v1373_v19  ;;  %v1453_v13 = vrot.slane %v3921_v10, %v3593_v35  ;;  %v1257_v4 = vrot.slane %v3941_v60, %v3512_v43 }
 0x23b   : > { %v1674_v44 = vmul.f32 %v4584_v42, %v3762_v26  ;;  %v1694_v47 = vunpack.c.0.s8 %v1693_v12  ;;  %v4585_v26 = vrot.slane %v3921_v10, %v3562_v57  ;;  %v1158_v30 = vmul.f32 %v1141_v39, %v3832_v36  ;;  %v4588_v39 = vld [vmem:[#allocation10_spill] sm:$0xff]  ;;  %v4590_v12 = vld [vmem:[#allocation3_spill] sm:$0xff] }
 0x23c   : > { %3253 = verf.f32 %v492_v58  ;;  %v1657_v25 = vrot.slane %v3900_v48, %v3606_v53  ;;  %v4586_v45 = vrot.slane %v3900_v48, %v3597_v46  ;;  %v1557_v5 = vrot.slane %v3921_v10, %v3597_v46  ;;  %v1620_v52 = vpop.permute.xlu1 %1619 }
 0x23d   : > { %v4032_v58 = vadd.f32 %v1674_v44, %v1578_v59  ;;  %v1054_v8 = vmul.f32 %v4585_v26, %v3834_v49  ;;  %v1561_v6 = vrot.slane %v3951_v51, %v3597_v46  ;;  %v1661_v2 = vrot.slane %v3921_v10, %v3606_v53  ;;  %v4591_v44 = vld [vmem:[#allocation11_spill] sm:$0xff] }
 0x23e   : > { %v1573_v33 = vmul.f32 %v4586_v45, %v3782_v32  ;;  %v1262_v36 = vmul.f32 %v1245_v41, %v4587_v9  ;;  %v1057_v38 = vmul.f32 %v1049_v55, %v4588_v39  ;;  %v952_v37 = vmul.f32 %v941_v0, %v4589_v7  ;;  %v4594_v26 = vld [vmem:[#allocation15_spill] sm:$0xff]  ;;  %v4076_v7 = vpop.permute.xlu0 %1432 }
 0x23f   : > { %v1062_v49 = vadd.f32 %v1054_v8, %v950_v21  ;;  %v4055_v62 = vsub.s32 %v1694_v47, %v4590_v12  ;;  %v4592_v21 = vld [vmem:[#allocation2_spill] sm:$0xff]  ;;  %v4595_v0 = vrot.slane %v3946_v56, %v3562_v57  ;;  %v4598_v9 = vrot.slane %v3921_v10, %v3577_v18 }
 0x240   : > { %v4057_v32 = vadd.f32 %v1573_v33, %v1477_v15  ;;  %v4593_v41 = vrot.slane %v4592_v21, %v3504_v40  ;;  %v4596_v15 = vld [vmem:[#allocation14_spill] sm:$0xff]  ;;  %v4597_v33 = vld [vmem:[#allocation9_spill] sm:$0xff]  ;;  %v491_v19 = vmul.f32 0.5, %v3977_v3  ;;  %v4604_v3 = vld [vmem:[#allocation7_spill] sm:$0xff] }
 0x241   : > { %v1056_v47 = vmul.f32 %v4595_v0, %v4594_v26  ;;  %v1166_v8 = vadd.f32 %v1158_v30, %v1062_v49  ;;  %v1160_v45 = vmul.f32 %v1149_v17, %v4596_v15  ;;  %v1366_v39 = vmul.f32 %v4598_v9, %v4597_v33  ;;  %v4599_v26 = vld [vmem:[#allocation16_spill] sm:$0xff]  ;;  %v4602_v15 = vld [vmem:[#allocation13_spill] sm:$0xff] }
 0x242   : > { %v953_v55 = vmul.f32 %v4593_v41, %v4591_v44  ;;  %v1264_v30 = vmul.f32 %v1253_v29, %v4599_v26  ;;  %v4600_v49 = vld [vmem:[#allocation4_spill] sm:$0xff]  ;;  %v4601_v17 = vrot.slane %v3931_v63, %v3597_v46  ;;  %v4603_v33 = vrot.slane %v3941_v60, %v3573_v16  ;;  %v1627_v26 = vpop.permute.xlu1 %1626  ;;  %v4611_v63 = vld [vmem:[#allocation19_spill] sm:$0xff] }
 0x243   : > { %v1270_v21 = vadd.f32 %v1262_v36, %v1166_v8  ;;  %v1064_v34 = vadd.f32 %v1056_v47, %v952_v37  ;;  %v4606_v37 = vld [vmem:[#allocation18_spill] sm:$0xff]  ;;  %v1368_v8 = vmul.f32 %v1357_v14, %v3962_v24 }
 0x244   : > { %v1065_v41 = vadd.f32 %v1057_v38, %v953_v55  ;;  %v1572_v0 = vmul.f32 %v4601_v17, %v4600_v49  ;;  %v1161_v9 = vmul.f32 %v4603_v33, %v4602_v15  ;;  %v1676_v29 = vmul.f32 %v1653_v22, %v4606_v37  ;;  %v4607_v55 = vld [vmem:[#allocation20_spill] sm:$0xff]  ;;  %v4608_v49 = vld [vmem:[#allocation5_spill] sm:$0xff]  ;;  %v4609_v15 = vld [vmem:[#allocation6_spill] sm:$0xff] }
 0x245   : > { %v1168_v38 = vadd.f32 %v1160_v45, %v1064_v34  ;;  %v1471_v47 = vmul.f32 %v1457_v20, %v4607_v55  ;;  %v4610_v34 = vld [vmem:[#allocation17_spill] sm:$0xff]  ;;  %v1265_v22 = vmul.f32 %v1257_v4, %v4611_v63 }
 0x246   : > { %v3254_v42 = vpop.eup %3253  ;;  %v1580_v17 = vadd.f32 %v1572_v0, %v4608_v49  ;;  %v1169_v45 = vadd.f32 %v1161_v9, %v1065_v41 }
 0x247   : > { %v494_v27 = vadd.f32 1.0, %v3254_v42  ;;  %v4605_v42 = vrot.slane %v3951_v51, %v3577_v18 }
 0x248   : > { %v1684_v14 = vadd.f32 %v1676_v29, %v1580_v17 }
 0x249   : > { %v1367_v44 = vmul.f32 %v4605_v42, %v4604_v3  ;;  %v495_v36 = vmul.f32 %v494_v27, %v491_v19  ;;  %v1272_v3 = vadd.f32 %v1264_v30, %v1168_v38  ;;  %v1374_v27 = vadd.f32 %v1366_v39, %v1270_v21  ;;  %v1530_v42 = vpop.permute.xlu0 %1529  ;;  %v1537_v30 = vpop.permute.xlu1 %1536 }
 0x24a   : > { %v1470_v19 = vmul.f32 %v1453_v13, %v4610_v34  ;;  %v1472_v13 = vmul.f32 %v1461_v28, %v1426_v23  ;;  %v1575_v23 = vmul.f32 %v1561_v6, %v4011_v31 }
 0x24b   : > { %v1375_v33 = vadd.f32 %v1367_v44, %v4609_v15  ;;  %v1698_v59 = vrot.slane %v495_v36, %v4055_v62  ;;  %v1691_v1 = vcombine.high %v495_v36, %v495_v36  ;;  %v1376_v55 = vadd.f32 %v1368_v8, %v1272_v3 }
 0x24c   : > { %v1369_v44 = vmul.f32 %v1361_v61, %v3994_v54  ;;  %v1273_v36 = vadd.f32 %v1265_v22, %v1169_v45  ;;  %v4612_v61 = vld [vmem:[#allocation21_spill] sm:$0xff] }
 0x24d   : > { %v1706_v37 = vcombine.high %v1698_v59, %v1698_v59  ;;  %v1705_v20 = vrot.slane %v1691_v1, %v4055_v62  ;;  %v1714_v24 = vrot.slane %v1698_v59, %v4055_v62  ;;  %v1479_v0 = vadd.f32 %v1471_v47, %v1375_v33  ;;  %v1634_v49 = vpop.permute.xlu0 %1633 }
 0x24e   : > { %v1478_v1 = vadd.f32 %v1470_v19, %v1374_v27  ;;  %v1574_v59 = vmul.f32 %v1557_v5, %v3979_v11  ;;  %v1677_v28 = vmul.f32 %v1657_v25, %v4612_v61  ;;  %v1678_v11 = vmul.f32 %v1661_v2, %v1620_v52 }
 0x24f   : > { %v1728_v39 = vrot.slane %v1706_v37, %v4055_v62  ;;  %v1707_v4 = vcombine.high %v1705_v20, %v1705_v20  ;;  %v1743_v21 = vrot.slane %v1714_v24, %v3504_v40  ;;  %v1721_v41 = vrot.slane %v1705_v20, %v4055_v62 }
 0x250   : > { %v1736_v9 = vcombine.high %v1714_v24, %v1714_v24  ;;  %v4613_v47 = vrot.slane %v3946_v56, %v3597_v46  ;;  %v1582_v31 = vadd.f32 %v1574_v59, %v1478_v1  ;;  %v1480_v2 = vadd.f32 %v1472_v13, %v1376_v55  ;;  %v1966_v59 = vld [vmem:[%s4551_s6 + $0x8] sm:$0xff] }
 0x251   : > { %v1738_v38 = vcombine.high %v1728_v39, %v1728_v39  ;;  %v1747_v54 = vrot.slane %v1728_v39, %v3504_v40  ;;  %v1780_v5 = vadd.f32 %v1743_v21, %v4032_v58  ;;  %v1735_v25 = vrot.slane %v1707_v4, %v4055_v62 }
 0x252   : > { %v1751_v29 = vrot.slane %v1736_v9, %v3504_v40  ;;  %v1576_v8 = vmul.f32 %v4613_v47, %v1530_v42  ;;  %v1737_v6 = vcombine.high %v1721_v41, %v1721_v41  ;;  %v1759_v10 = vrot.slane %v1721_v41, %v3504_v40  ;;  %v1641_v42 = vpop.permute.xlu1 %1640 }
 0x253   : > { %v1755_v48 = vrot.slane %v1738_v38, %v3504_v40  ;;  %v1781_v17 = vadd.f32 %v1747_v54, %v4019_v50  ;;  %3146 = vmatprep.mubr.msk.f32.mxu0 %vm466_vm2, %v1780_v5  ;;  %v1377_v52 = vadd.f32 %v1369_v44, %v1273_v36  ;;  %v1685_v15 = vadd.f32 %v1677_v28, %v4057_v32 }
 0x254   : > { %v1782_v58 = vadd.f32 %v1751_v29, %v1684_v14  ;;  %v4614_v33 = vrot.slane %v3951_v51, %v3606_v53  ;;  %v4615_v50 = vrot.slane %v3941_v60, %v3593_v35  ;;  %v4616_v27 = vrot.slane %v3946_v56, %v3606_v53 }
 0x255   : > { %3147 = vmatmul.mubr.msk.f32.vlgmr.msra.gmra.mrb[2].mxu0 %vm466_vm2, %v1781_v17  ;;  %v1583_v19 = vadd.f32 %v1575_v23, %v1479_v0  ;;  %v1686_v45 = vadd.f32 %v1678_v11, %v1582_v31  ;;  %v1783_v32 = vadd.f32 %v1755_v48, %v1685_v15  ;;  %v1763_v51 = vrot.slane %v1735_v25, %v3504_v40 }
 0x256   : > { %v1679_v3 = vmul.f32 %v4614_v33, %v1627_v26  ;;  %v1473_v62 = vmul.f32 %v4615_v50, %v4076_v7  ;;  %v1680_v34 = vmul.f32 %v4616_v27, %v1634_v49  ;;  %3149 = vmatprep.mubr.msk.f32.mxu0 %vm466_vm2, %v1782_v58  ;;  %v4617_v26 = vrot.slane %v3941_v60, %v3597_v46 }
 0x257   : > { %v1739_v22 = vcombine.high %v1735_v25, %v1735_v25  ;;  %v1584_v37 = vadd.f32 %v1576_v8, %v1480_v2  ;;  %v1784_v20 = vadd.f32 %v1759_v10, %v1686_v45  ;;  %v1767_v7 = vrot.slane %v1737_v6, %v3504_v40 }
 0x258   : > { %v1577_v63 = vmul.f32 %v4617_v26, %v1537_v30  ;;  %v1687_v24 = vadd.f32 %v1679_v3, %v1583_v19  ;;  %v1481_v56 = vadd.f32 %v1473_v62, %v1377_v52  ;;  %v4618_v14 = vrot.slane %v3941_v60, %v3606_v53  ;;  %v1965_v60 = vld [vmem:[%s4551_s6] sm:$0xff] }
 0x259   : > { %3150 = vmatmul.mubr.msk.f32.gmra.mrb[4].mxu0 %vm466_vm2, %v1783_v32  ;;  %v1688_v55 = vadd.f32 %v1680_v34, %v1584_v37  ;;  %v1771_v39 = vrot.slane %v1739_v22, %v3504_v40  ;;  %v3193_v41 = vpack.c.bf16 %v1966_v59, %v1965_v60  ;;  %v4176_v30 = vld [vmem:[%s4552_s7] sm:$0xff] }
 0x25a   : > { %v1681_v0 = vmul.f32 %v4618_v14, %v1641_v42  ;;  %3152 = vmatprep.mubr.msk.f32.mxu0 %vm466_vm2, %v1784_v20  ;;  %v1785_v44 = vadd.f32 %v1763_v51, %v1687_v24  ;;  %v1585_v13 = vadd.f32 %v1577_v63, %v1481_v56  ;;  %v1795_v9 = vrot.slane %v4176_v30, %v3577_v18 }
 0x25b   : > { %v1786_v4 = vadd.f32 %v1767_v7, %v1688_v55  ;;  %3194 = vmatprep.subr.bf16.mxu0 %v3193_v41  ;;  %3197 = vmatprep.subr.bf16.mxu1 %v3193_v41 }
 0x25c   : > { %v1689_v21 = vadd.f32 %v1681_v0, %v1585_v13  ;;  %3196 = vmatpush3.bf16.msra.mxu0 %v3193_v41  ;;  %3198 = vmatpush3.bf16.msra.mxu1 %v3193_v41 }
 0x25d   : > { %3153 = vmatmul.mubr.msk.f32.gmra.mrb[6].mxu0 %vm466_vm2, %v1785_v44 }
 0x25e   : > { %3155 = vmatprep.mubr.msk.f32.mxu0 %vm466_vm2, %v1786_v4  ;;  %v1787_v1 = vadd.f32 %v1771_v39, %v1689_v21 }
 0x261   : > { %3156 = vmatmul.mubr.msk.f32.gmra.mrb[8].mxu0 %vm466_vm2, %v1787_v1  ;;  %vm2385_vm2 = vcmask 1041409  }
 0x328   : > { %v3148_v36 = vpop.f32.mrb[2].mxu0 }
 0x329   : > { %v1892_v38 = vadd.f32 %v3148_v36, %v1795_v9  ;;  %v1886_v54 = vpop.f32.mrb[3].mxu0 }
 0x32a   : > { %v1887_v61 = vadd.f32 %v1886_v54, %v1795_v9  ;;  %v1970_v54 = vrot.slane %v4176_v30, %v3593_v35 }
 0x32b   : > { %v1934_v28 = vmul.f32 0.70710677, %v1892_v38  ;;  %v1926_v45 = vmul.f32 0.5, %v1892_v38 }
 0x32c   : > { %v1933_v23 = vmul.f32 0.70710677, %v1887_v61  ;;  %v3151_v11 = vpop.f32.mrb[4].mxu0  ;;  %v1925_v34 = vmul.f32 0.5, %v1887_v61 }
 0x32d   : > { %3255 = verf.f32 %v1934_v28  ;;  %v1902_v5 = vadd.f32 %v3151_v11, %v1795_v9  ;;  %v1896_v29 = vpop.f32.mrb[5].mxu0 }
 0x32e   : > { %3257 = verf.f32 %v1933_v23  ;;  %v1897_v47 = vadd.f32 %v1896_v29, %v1795_v9 }
 0x32f   : > { %v1936_v8 = vmul.f32 0.70710677, %v1902_v5  ;;  %v1928_v20 = vmul.f32 0.5, %v1902_v5 }
 0x330   : > { %v1935_v49 = vmul.f32 0.70710677, %v1897_v47  ;;  %v3154_v48 = vpop.f32.mrb[6].mxu0  ;;  %v1927_v22 = vmul.f32 0.5, %v1897_v47 }
 0x331   : > { %3259 = verf.f32 %v1936_v8  ;;  %v1912_v25 = vadd.f32 %v3154_v48, %v1795_v9  ;;  %v1906_v17 = vpop.f32.mrb[7].mxu0 }
 0x332   : > { %3261 = verf.f32 %v1935_v49  ;;  %v1907_v31 = vadd.f32 %v1906_v17, %v1795_v9 }
 0x333   : > { %v1938_v6 = vmul.f32 0.70710677, %v1912_v25  ;;  %v1930_v13 = vmul.f32 0.5, %v1912_v25 }
 0x334   : > { %v1937_v10 = vmul.f32 0.70710677, %v1907_v31  ;;  %v3157_v58 = vpop.f32.mrb[8].mxu0  ;;  %v1929_v55 = vmul.f32 0.5, %v1907_v31 }
 0x335   : > { %3263 = verf.f32 %v1938_v6  ;;  %v1922_v2 = vadd.f32 %v3157_v58, %v1795_v9  ;;  %v1916_v52 = vpop.f32.mrb[9].mxu0 }
 0x336   : > { %3265 = verf.f32 %v1937_v10  ;;  %v1917_v15 = vadd.f32 %v1916_v52, %v1795_v9 }
 0x337   : > { %v3256_v33 = vpop.eup %3255  ;;  %v1940_v3 = vmul.f32 0.70710677, %v1922_v2  ;;  %v1932_v9 = vmul.f32 0.5, %v1922_v2 }
 0x338   : > { %v3258_v50 = vpop.eup %3257  ;;  %v1950_v62 = vadd.f32 1.0, %v3256_v33  ;;  %v1939_v27 = vmul.f32 0.70710677, %v1917_v15  ;;  %v1931_v59 = vmul.f32 0.5, %v1917_v15 }
 0x339   : > { %v1949_v19 = vadd.f32 1.0, %v3258_v50  ;;  %3267 = verf.f32 %v1940_v3 }
 0x33a   : > { %3269 = verf.f32 %v1939_v27  ;;  %v1958_v26 = vmul.f32 %v1950_v62, %v1926_v45 }
 0x33b   : > { %v3260_v42 = vpop.eup %3259  ;;  %v1957_v32 = vmul.f32 %v1949_v19, %v1925_v34 }
 0x33c   : > { %v3262_v51 = vpop.eup %3261  ;;  %v1952_v63 = vadd.f32 1.0, %v3260_v42 }
 0x33d   : > { %v1951_v37 = vadd.f32 1.0, %v3262_v51  ;;  %3162 = vmatprep.mubr.msk.f32.mxu0 %vm392_vm1, %v1957_v32 }
 0x33e   : > { %3163 = vmatmul.mubr.msk.f32.vlgmr.msra.gmra.mrb[10].mxu0 %vm392_vm1, %v1958_v26  ;;  %v1960_v14 = vmul.f32 %v1952_v63, %v1928_v20 }
 0x33f   : > { %v3264_v7 = vpop.eup %3263  ;;  %v1959_v24 = vmul.f32 %v1951_v37, %v1927_v22 }
 0x340   : > { %v3266_v56 = vpop.eup %3265  ;;  %v1954_v0 = vadd.f32 1.0, %v3264_v7 }
 0x341   : > { %v1953_v44 = vadd.f32 1.0, %v3266_v56  ;;  %3165 = vmatprep.mubr.msk.f32.mxu1 %vm392_vm1, %v1959_v24 }
 0x342   : > { %3166 = vmatmul.mubr.msk.f32.vlgmr.msra.gmra.mrb[8].mxu1 %vm392_vm1, %v1960_v14  ;;  %v1962_v1 = vmul.f32 %v1954_v0, %v1930_v13 }
 0x343   : > { %v3268_v39 = vpop.eup %3267  ;;  %v1961_v4 = vmul.f32 %v1953_v44, %v1929_v55 }
 0x344   : > { %v3270_v21 = vpop.eup %3269  ;;  %v1956_v60 = vadd.f32 1.0, %v3268_v39 }
 0x345   : > { %v1955_v41 = vadd.f32 1.0, %v3270_v21  ;;  %3168 = vmatprep.mubr.msk.f32.mxu1 %vm392_vm1, %v1961_v4 }
 0x346   : > { %3169 = vmatmul.mubr.msk.f32.gmra.mrb[10].mxu1 %vm392_vm1, %v1962_v1  ;;  %v1964_v38 = vmul.f32 %v1956_v60, %v1932_v9 }
 0x347   : > { %v1963_v36 = vmul.f32 %v1955_v41, %v1931_v59 }
 0x349   : > { %3171 = vmatprep.mubr.msk.f32.mxu1 %vm392_vm1, %v1963_v36 }
 0x34a   : > { %3172 = vmatmul.mubr.msk.f32.gmra.mrb[12].mxu1 %vm392_vm1, %v1964_v38 }
 0x411   : > { %v3164_v61 = vpop.f32.mrb[10].mxu0 }
 0x412   : > { %v2067_v28 = vadd.f32 %v3164_v61, %v1970_v54  ;;  %v2061_v23 = vpop.f32.mrb[11].mxu0 }
 0x413   : > { %v2062_v11 = vadd.f32 %v2061_v23, %v1970_v54 }
 0x414   : > { %v2103_v5 = vsel %vm392_vm1, %v2067_v28, 0.0 }
 0x415   : > { %v3167_v29 = vpop.f32.mrb[8].mxu1  ;;  %2104 = vadd.xlane.f32.xlu1 %v2103_v5  ;;  %v2100_v47 = vsel %vm392_vm1, %v2062_v11, 0.0 }
 0x416   : > { %v2077_v8 = vadd.f32 %v3167_v29, %v1970_v54  ;;  %v2071_v49 = vpop.f32.mrb[9].mxu1  ;;  %2101 = vadd.xlane.f32.xlu0 %v2100_v47 }
 0x417   : > { %v2072_v25 = vadd.f32 %v2071_v49, %v1970_v54 }
 0x418   : > { %v2109_v48 = vsel %vm392_vm1, %v2077_v8, 0.0 }
 0x419   : > { %v3170_v17 = vpop.f32.mrb[10].mxu1  ;;  %v2106_v52 = vsel %vm392_vm1, %v2072_v25, 0.0 }
 0x41a   : > { %v2081_v31 = vpop.f32.mrb[11].mxu1  ;;  %2110 = vadd.xlane.f32.xlu0 %v2109_v48  ;;  %v2087_v10 = vadd.f32 %v3170_v17, %v1970_v54 }
 0x41b   : > { %v2082_v6 = vadd.f32 %v2081_v31, %v1970_v54 }
 0x41c   : > { %v2115_v50 = vsel %vm392_vm1, %v2087_v10, 0.0 }
 0x41d   : > { %v3173_v58 = vpop.f32.mrb[12].mxu1  ;;  %v2112_v2 = vsel %vm392_vm1, %v2082_v6, 0.0 }
 0x41e   : > { %2113 = vadd.xlane.f32.xlu1 %v2112_v2  ;;  %2107 = vadd.xlane.f32.xlu0 %v2106_v52  ;;  %v2091_v15 = vpop.f32.mrb[13].mxu1  ;;  %v2097_v3 = vadd.f32 %v3173_v58, %v1970_v54 }
 0x41f   : > { %v2092_v33 = vadd.f32 %v2091_v15, %v1970_v54 }
 0x420   : > { %v2121_v27 = vsel %vm392_vm1, %v2097_v3, 0.0 }
 0x421   : > { %v2118_v62 = vsel %vm392_vm1, %v2092_v33, 0.0 }
 0x422   : > { %2116 = vadd.xlane.f32.xlu0 %v2115_v50  ;;  %2119 = vadd.xlane.f32.xlu1 %v2118_v62 }
 0x426   : > { %2122 = vadd.xlane.f32.xlu0 %v2121_v27 }
 0x4a2   : > { %v2105_v34 = vpop.xlane.xlu1 %2104 }
 0x4a3   : > { %v2126_v19 = vmul.f32 0.0625, %v2105_v34  ;;  %v2102_v45 = vpop.xlane.xlu0 %2101 }
 0x4a4   : > { %v2125_v42 = vmul.f32 0.0625, %v2102_v45  ;;  %v4243_v45 = vrot.slane %v4176_v30, %v3597_v46 }
 0x4a5   : > { %v4198_v32 = vsub.f32 %v2067_v28, %v2126_v19 }
 0x4a6   : > { %v4200_v51 = vsub.f32 %v2062_v11, %v2125_v42 }
 0x4a7   : > { %v2111_v26 = vpop.xlane.xlu0 %2110  ;;  %v2142_v63 = vmul.f32 %v4198_v32, %v4198_v32 }
 0x4a8   : > { %v2128_v22 = vmul.f32 0.0625, %v2111_v26  ;;  %v2141_v37 = vmul.f32 %v4200_v51, %v4200_v51 }
 0x4a9   : > { %v2152_v20 = vsel %vm392_vm1, %v2142_v63, 0.0 }
 0x4aa   : > { %v4207_v7 = vsub.f32 %v2077_v8, %v2128_v22  ;;  %2153 = vadd.xlane.f32.xlu0 %v2152_v20  ;;  %v2149_v24 = vsel %vm392_vm1, %v2141_v37, 0.0  ;;  %v4247_v37 = vrot.slane %v4176_v30, %v3606_v53 }
 0x4ab   : > { %v2114_v56 = vpop.xlane.xlu1 %2113  ;;  %v2108_v14 = vpop.xlane.xlu0 %2107  ;;  %2150 = vadd.xlane.f32.xlu1 %v2149_v24 }
 0x4ac   : > { %v2129_v0 = vmul.f32 0.0625, %v2114_v56  ;;  %v2127_v55 = vmul.f32 0.0625, %v2108_v14  ;;  %v2144_v44 = vmul.f32 %v4207_v7, %v4207_v7 }
 0x4ae   : > { %v4212_v13 = vsub.f32 %v2082_v6, %v2129_v0  ;;  %v4214_v39 = vsub.f32 %v2072_v25, %v2127_v55  ;;  %v2158_v4 = vsel %vm392_vm1, %v2144_v44, 0.0  ;;  %v384_v25 = vld [vmem:[%s4552_s7 + $0x8] sm:$0x7] }
 0x4af   : > { %v2117_v21 = vpop.xlane.xlu0 %2116  ;;  %2159 = vadd.xlane.f32.xlu0 %v2158_v4  ;;  %v2120_v1 = vpop.xlane.xlu1 %2119  ;;  %v2266_v17 = vrot.slane %v384_v25, 2  ;;  %v4251_v14 = vrot.slane %v384_v25, %v3504_v40  ;;  %v4254_v0 = vrot.slane %v384_v25, %v3562_v57 }
 0x4b0   : > { %v2130_v60 = vmul.f32 0.0625, %v2117_v21  ;;  %v2131_v59 = vmul.f32 0.0625, %v2120_v1  ;;  %v2143_v41 = vmul.f32 %v4214_v39, %v4214_v39  ;;  %v2145_v54 = vmul.f32 %v4212_v13, %v4212_v13 }
 0x4b1   : > { %3199 = vpush %v2266_v17 }
 0x4b2   : > { %v4219_v9 = vsub.f32 %v2087_v10, %v2130_v60  ;;  %v4221_v36 = vsub.f32 %v2092_v33, %v2131_v59  ;;  %v2155_v38 = vsel %vm392_vm1, %v2143_v41, 0.0  ;;  %v2161_v29 = vsel %vm392_vm1, %v2145_v54, 0.0 }
 0x4b3   : > { %v2123_v61 = vpop.xlane.xlu0 %2122  ;;  %2156 = vadd.xlane.f32.xlu1 %v2155_v38 }
 0x4b4   : > { %v2132_v28 = vmul.f32 0.0625, %v2123_v61  ;;  %v2146_v23 = vmul.f32 %v4219_v9, %v4219_v9  ;;  %v2147_v47 = vmul.f32 %v4221_v36, %v4221_v36 }
 0x4b6   : > { %v4228_v11 = vsub.f32 %v2097_v3, %v2132_v28  ;;  %v2164_v5 = vsel %vm392_vm1, %v2146_v23, 0.0  ;;  %v2167_v48 = vsel %vm392_vm1, %v2147_v47, 0.0 }
 0x4b7   : > { %2165 = vadd.xlane.f32.xlu0 %v2164_v5  ;;  %2162 = vadd.xlane.f32.xlu1 %v2161_v29 }
 0x4b8   : > { %v2148_v8 = vmul.f32 %v4228_v11, %v4228_v11 }
 0x4ba   : > { %v2170_v49 = vsel %vm392_vm1, %v2148_v8, 0.0 }
 0x4bb   : > { %2171 = vadd.xlane.f32.xlu0 %v2170_v49  ;;  %2168 = vadd.xlane.f32.xlu1 %v2167_v48 }
 0x4cc   : > { %2314 = vrot.lane.b32.xlu1 %v2266_v17, %s3356_s14 }
 0x4e2   : > { %s4319_s15 = spop %3199 }
 0x537   : > { %v2154_v31 = vpop.xlane.xlu0 %2153 }
 0x538   : > { %v2174_v6 = vmul.f32 0.0625, %v2154_v31  ;;  %v2151_v10 = vpop.xlane.xlu1 %2150 }
 0x539   : > { %v2173_v58 = vmul.f32 0.0625, %v2151_v10 }
 0x53a   : > { %v2182_v2 = vadd.f32 1e-05, %v2174_v6 }
 0x53b   : > { %v2181_v52 = vadd.f32 1e-05, %v2173_v58 }
 0x53c   : > { %3271 = vrsqrt.f32 %v2182_v2  ;;  %v2160_v15 = vpop.xlane.xlu0 %2159 }
 0x53d   : > { %3273 = vrsqrt.f32 %v2181_v52  ;;  %v2176_v33 = vmul.f32 0.0625, %v2160_v15 }
 0x53f   : > { %v2184_v3 = vadd.f32 1e-05, %v2176_v33 }
 0x540   : > { %v2157_v50 = vpop.xlane.xlu1 %2156 }
 0x541   : > { %3275 = vrsqrt.f32 %v2184_v3  ;;  %v2175_v62 = vmul.f32 0.0625, %v2157_v50 }
 0x543   : > { %v2183_v27 = vadd.f32 1e-05, %v2175_v62 }
 0x544   : > { %v2166_v34 = vpop.xlane.xlu0 %2165  ;;  %v2163_v19 = vpop.xlane.xlu1 %2162 }
 0x545   : > { %3277 = vrsqrt.f32 %v2183_v27  ;;  %v2178_v42 = vmul.f32 0.0625, %v2166_v34  ;;  %v2177_v26 = vmul.f32 0.0625, %v2163_v19 }
 0x546   : > { %v3272_v63 = vpop.eup %3271 }
 0x547   : > { %v3274_v22 = vpop.eup %3273  ;;  %v2186_v20 = vadd.f32 1e-05, %v2178_v42  ;;  %v2185_v24 = vadd.f32 1e-05, %v2177_v26  ;;  %v2198_v56 = vmul.f32 %v3272_v63, %v4198_v32 }
 0x548   : > { %v2172_v55 = vpop.xlane.xlu0 %2171  ;;  %v2169_v44 = vpop.xlane.xlu1 %2168  ;;  %v2197_v4 = vmul.f32 %v3274_v22, %v4200_v51 }
 0x549   : > { %3279 = vrsqrt.f32 %v2186_v20  ;;  %v2180_v21 = vmul.f32 0.0625, %v2172_v55  ;;  %v2179_v1 = vmul.f32 0.0625, %v2169_v44  ;;  %v2210_v30 = vmul.f32 %v4243_v45, %v2198_v56 }
 0x54a   : > { %3281 = vrsqrt.f32 %v2185_v24  ;;  %v2209_v60 = vmul.f32 %v4243_v45, %v2197_v4 }
 0x54b   : > { %v3276_v59 = vpop.eup %3275  ;;  %v2188_v32 = vadd.f32 1e-05, %v2180_v21  ;;  %v2187_v41 = vadd.f32 1e-05, %v2179_v1  ;;  %v2222_v38 = vadd.f32 %v4247_v37, %v2210_v30 }
 0x54c   : > { %v2221_v54 = vadd.f32 %v4247_v37, %v2209_v60  ;;  %v2200_v61 = vmul.f32 %v3276_v59, %v4207_v7  ;;  %v2315_v28 = vpop.permute.xlu1 %2314 }
 0x54d   : > { %3283 = vrsqrt.f32 %v2188_v32  ;;  %v2283_v51 = vmul.f32 %v4254_v0, %v2222_v38  ;;  %3201 = vpush %v2315_v28  ;;  %v4264_v23 = vmul.f32 %v4251_v14, %v2222_v38 }
 0x54e   : > { %3285 = vrsqrt.f32 %v2187_v41  ;;  %v2212_v5 = vmul.f32 %v4243_v45, %v2200_v61  ;;  %v4268_v29 = vmul.f32 %v4251_v14, %v2221_v54  ;;  %v2282_v49 = vmul.f32 %v4254_v0, %v2221_v54 }
 0x54f   : > { %v3278_v47 = vpop.eup %3277  ;;  %v2293_v8 = vsel %vm392_vm1, %v2283_v51, 0.0  ;;  %v4619_v41 = vlaneseq }
 0x550   : > { %2294 = vadd.xlane.f32.xlu0 %v2293_v8  ;;  %v2224_v7 = vadd.f32 %v4247_v37, %v2212_v5  ;;  %v2199_v48 = vmul.f32 %v3278_v47, %v4214_v39  ;;  %v2290_v6 = vsel %vm392_vm1, %v2282_v49, 0.0 }
 0x551   : > { %v2352_v38 = vand.u32 127, %v4619_v41 }
 0x552   : > { %v2211_v25 = vmul.f32 %v4243_v45, %v2199_v48  ;;  %v4276_v17 = vmul.f32 %v4251_v14, %v2224_v7  ;;  %v2285_v10 = vmul.f32 %v4254_v0, %v2224_v7 }
 0x553   : > { %v3280_v31 = vpop.eup %3279  ;;  %v4323_v28 = vsub.s32 %v2352_v38, %v4590_v12 }
 0x554   : > { %v3282_v58 = vpop.eup %3281  ;;  %2291 = vadd.xlane.f32.xlu0 %v2290_v6  ;;  %v2223_v2 = vadd.f32 %v4247_v37, %v2211_v25  ;;  %v2202_v52 = vmul.f32 %v3280_v31, %v4219_v9  ;;  %v2299_v62 = vsel %vm392_vm1, %v2285_v10, 0.0 }
 0x555   : > { %v2201_v15 = vmul.f32 %v3282_v58, %v4212_v13 }
 0x556   : > { %v2284_v39 = vmul.f32 %v4254_v0, %v2223_v2  ;;  %v2214_v33 = vmul.f32 %v4243_v45, %v2202_v52  ;;  %v4286_v3 = vmul.f32 %v4251_v14, %v2223_v2 }
 0x557   : > { %v3284_v50 = vpop.eup %3283  ;;  %v2213_v27 = vmul.f32 %v4243_v45, %v2201_v15 }
 0x558   : > { %v3286_v34 = vpop.eup %3285  ;;  %2300 = vadd.xlane.f32.xlu0 %v2299_v62  ;;  %v2226_v19 = vadd.f32 %v4247_v37, %v2214_v33  ;;  %v2204_v9 = vmul.f32 %v3284_v50, %v4228_v11  ;;  %v2296_v26 = vsel %vm392_vm1, %v2284_v39, 0.0 }
 0x559   : > { %v2225_v13 = vadd.f32 %v4247_v37, %v2213_v27  ;;  %v2203_v42 = vmul.f32 %v3286_v34, %v4221_v36 }
 0x55a   : > { %v2216_v63 = vmul.f32 %v4243_v45, %v2204_v9  ;;  %v4297_v22 = vmul.f32 %v4251_v14, %v2226_v19  ;;  %v2287_v24 = vmul.f32 %v4254_v0, %v2226_v19 }
 0x55b   : > { %v2286_v20 = vmul.f32 %v4254_v0, %v2225_v13  ;;  %v2215_v56 = vmul.f32 %v4243_v45, %v2203_v42  ;;  %v4303_v55 = vmul.f32 %v4251_v14, %v2225_v13 }
 0x55c   : > { %2297 = vadd.xlane.f32.xlu0 %v2296_v26  ;;  %v2228_v11 = vadd.f32 %v4247_v37, %v2216_v63  ;;  %v2305_v21 = vsel %vm392_vm1, %v2287_v24, 0.0 }
 0x55d   : > { %v2302_v36 = vsel %vm392_vm1, %v2286_v20, 0.0  ;;  %v2227_v44 = vadd.f32 %v4247_v37, %v2215_v56 }
 0x55e   : > { %2303 = vadd.xlane.f32.xlu1 %v2302_v36  ;;  %v4309_v4 = vmul.f32 %v4251_v14, %v2228_v11  ;;  %v2289_v60 = vmul.f32 %v4254_v0, %v2228_v11 }
 0x55f   : > { %v2288_v1 = vmul.f32 %v4254_v0, %v2227_v44  ;;  %v4314_v45 = vmul.f32 %v4251_v14, %v2227_v44 }
 0x560   : > { %2306 = vadd.xlane.f32.xlu0 %v2305_v21  ;;  %v2311_v59 = vsel %vm392_vm1, %v2289_v60, 0.0 }
 0x561   : > { %v2308_v30 = vsel %vm392_vm1, %v2288_v1, 0.0 }
 0x564   : > { %2309 = vadd.xlane.f32.xlu0 %v2308_v30 }
 0x568   : > { %2312 = vadd.xlane.f32.xlu0 %v2311_v59 }
 0x57e   : > { %s3202_s16 = spop %3201 }
 0x57f   : > { %v2317_v54 = vstv %s3202_s16 }
 0x5dd   : > { %v2295_v37 = vpop.xlane.xlu0 %2294 }
 0x5de   : > { %v2320_v51 = vadd.f32 %v2317_v54, %v2295_v37 }
 0x5e0   : > { %v2360_v49 = vrot.slane %v2320_v51, %v4323_v28 }
 0x5e1   : > { %v2292_v32 = vpop.xlane.xlu0 %2291 }
 0x5e2   : > { %v2319_v14 = vadd.f32 %v2317_v54, %v2292_v32 }
 0x5e4   : > { %v2356_v0 = vrot.slane %v2319_v14, %v4323_v28 }
 0x5e5   : > { %v2301_v61 = vpop.xlane.xlu0 %2300 }
 0x5e6   : > { %v2322_v7 = vadd.f32 %v2317_v54, %v2301_v61  ;;  %v2386_v6 = vsel %vm2385_vm2, %v2360_v49, %v2356_v0 }
 0x5e8   : > { %v2368_v10 = vrot.slane %v2322_v7, %v4323_v28 }
 0x5e9   : > { %v2298_v5 = vpop.xlane.xlu0 %2297 }
 0x5ea   : > { %v2321_v47 = vadd.f32 %v2317_v54, %v2298_v5 }
 0x5eb   : > { %v2304_v8 = vpop.xlane.xlu1 %2303 }
 0x5ec   : > { %v2364_v48 = vrot.slane %v2321_v47, %v4323_v28  ;;  %v2323_v25 = vadd.f32 %v2317_v54, %v2304_v8 }
 0x5ed   : > { %v2307_v31 = vpop.xlane.xlu0 %2306 }
 0x5ee   : > { %v2388_v12 = vsel %vm2387_vm6, %v2364_v48, %v2386_v6  ;;  %v2324_v58 = vadd.f32 %v2317_v54, %v2307_v31  ;;  %v2372_v2 = vrot.slane %v2323_v25, %v4323_v28 }
 0x5ef   : > { %v2390_v15 = vsel %vm2389_vm7, %v2368_v10, %v2388_v12 }
 0x5f0   : > { %v2376_v33 = vrot.slane %v2324_v58, %v4323_v28  ;;  %v2392_v50 = vsel %vm2391_vm8, %v2372_v2, %v2390_v15 }
 0x5f1   : > { %v2310_v52 = vpop.xlane.xlu0 %2309 }
 0x5f2   : > { %v2325_v39 = vadd.f32 %v2317_v54, %v2310_v52  ;;  %v2394_v19 = vsel %vm2393_vm9, %v2376_v33, %v2392_v50 }
 0x5f4   : > { %v2380_v62 = vrot.slane %v2325_v39, %v4323_v28 }
 0x5f5   : > { %v2313_v27 = vpop.xlane.xlu0 %2312 }
 0x5f6   : > { %v2326_v34 = vadd.f32 %v2317_v54, %v2313_v27  ;;  %v2396_v13 = vsel %vm2395_vm10, %v2380_v62, %v2394_v19 }
 0x5f8   : > { %v2384_v9 = vrot.slane %v2326_v34, %v4323_v28 }
 0x5fa   : > { %v2398_v42 = vsel %vm2397_vm11, %v2384_v9, %v2396_v13 }
 0x5fb   : > { %v2400_v26 = vsel %vm705_vm12, %v2398_v42, -inf }
 0x5fc   : > { %2401 = vmax.xlane.f32.xlu0 %v2400_v26 }
 0x689   : > { %v2402_v63 = vpop.xlane.xlu0 %2401 }
 0x68a   : > { %v2407_v20 = vrot.slane %v2402_v63, %v3504_v40  ;;  %v2411_v24 = vrot.slane %v2402_v63, %v3562_v57  ;;  %v2415_v56 = vrot.slane %v2402_v63, %v3573_v16  ;;  %v2431_v11 = vrot.slane %v2402_v63, %v3597_v46 }
 0x68b   : > { %v2419_v36 = vrot.slane %v2402_v63, %v3512_v43  ;;  %v2423_v37 = vrot.slane %v2402_v63, %v3577_v18  ;;  %v2427_v54 = vrot.slane %v2402_v63, %v3593_v35 }
 0x68c   : > { %v2444_v44 = vsub.f32 %v2319_v14, %v2407_v20  ;;  %v2445_v21 = vsub.f32 %v2320_v51, %v2411_v24  ;;  %v2446_v1 = vsub.f32 %v2321_v47, %v2415_v56  ;;  %v2450_v30 = vsub.f32 %v2325_v39, %v2431_v11 }
 0x68d   : > { %v2447_v32 = vsub.f32 %v2322_v7, %v2419_v36  ;;  %v2448_v61 = vsub.f32 %v2323_v25, %v2423_v37  ;;  %v2435_v14 = vrot.slane %v2402_v63, %v3606_v53  ;;  %v2449_v51 = vsub.f32 %v2324_v58, %v2427_v54 }
 0x68e   : > { %v2452_v60 = vmul.f32 1.442695, %v2444_v44  ;;  %v2454_v59 = vmul.f32 1.442695, %v2445_v21  ;;  %v2456_v41 = vmul.f32 1.442695, %v2446_v1 }
 0x68f   : > { %v2464_v38 = vmul.f32 1.442695, %v2450_v30  ;;  %v2458_v5 = vmul.f32 1.442695, %v2447_v32  ;;  %v2460_v0 = vmul.f32 1.442695, %v2448_v61  ;;  %v2451_v49 = vsub.f32 %v2326_v34, %v2435_v14 }
 0x690   : > { %3287 = vpow2.f32 %v2452_v60  ;;  %v2462_v7 = vmul.f32 1.442695, %v2449_v51  ;;  %v2241_v60 = vsel %vm392_vm1, %v4268_v29, 0.0  ;;  %v2247_v37 = vsel %vm392_vm1, %v4286_v3, 0.0 }
 0x691   : > { %3289 = vpow2.f32 %v2454_v59  ;;  %v2466_v31 = vmul.f32 1.442695, %v2451_v49  ;;  %v2244_v59 = vsel %vm392_vm1, %v4264_v23, 0.0  ;;  %v2250_v32 = vsel %vm392_vm1, %v4276_v17, 0.0 }
 0x692   : > { %3291 = vpow2.f32 %v2456_v41  ;;  %v2253_v41 = vsel %vm392_vm1, %v4303_v55, 0.0  ;;  %v2256_v29 = vsel %vm392_vm1, %v4297_v22, 0.0  ;;  %v2259_v23 = vsel %vm392_vm1, %v4314_v45, 0.0 }
 0x693   : > { %3293 = vpow2.f32 %v2464_v38  ;;  %v2262_v3 = vsel %vm392_vm1, %v4309_v4, 0.0  ;;  %v4410_v22 = vstv %s4319_s15 }
 0x694   : > { %3295 = vpow2.f32 %v2458_v5 }
 0x695   : > { %3297 = vpow2.f32 %v2460_v0 }
 0x696   : > { %3299 = vpow2.f32 %v2462_v7 }
 0x697   : > { %3301 = vpow2.f32 %v2466_v31 }
 0x69a   : > { %v4349_v47 = vpop.eup %3287 }
 0x69b   : > { %v4351_v8 = vpop.eup %3289  ;;  %2477 = vperm.xlu0 %3217, %v4349_v47  }
 0x69c   : > { %2480 = vperm.xlu1 %3218, %v4351_v8   ;;  %v4355_v48 = vpop.eup %3291 }
 0x69d   : > { %v4358_v25 = vpop.eup %3293 }
 0x69e   : > { %v4361_v6 = vpop.eup %3295 }
 0x69f   : > { %2483 = vperm.xlu0 %3217, %v4355_v48   ;;  %v4364_v12 = vpop.eup %3297 }
 0x6a0   : > { %2495 = vperm.xlu1 %3218, %v4358_v25   ;;  %v4367_v10 = vpop.eup %3299 }
 0x6a1   : > { %v4370_v58 = vpop.eup %3301 }
 0x6a3   : > { %2486 = vperm.xlu0 %3217, %v4361_v6  }
 0x6a7   : > { %2489 = vperm.xlu0 %3217, %v4364_v12  }
 0x6ab   : > { %2492 = vperm.xlu0 %3217, %v4367_v10  }
 0x6af   : > { %2498 = vperm.xlu0 %3217, %v4370_v58  }
 0x71a   : > { %v2478_v2 = vpop.permute.xlu0 %2477 }
 0x71b   : > { %v2481_v15 = vpop.permute.xlu1 %2480  ;;  %v2503_v50 = vrot.slane %v2478_v2, %v4323_v28 }
 0x71c   : > { %v2507_v33 = vrot.slane %v2481_v15, %v4323_v28 }
 0x71e   : > { %v2484_v52 = vpop.permute.xlu0 %2483  ;;  %v2532_v9 = vsel %vm2385_vm2, %v2507_v33, %v2503_v50 }
 0x71f   : > { %v2511_v62 = vrot.slane %v2484_v52, %v4323_v28  ;;  %v2496_v26 = vpop.permute.xlu1 %2495 }
 0x720   : > { %v2527_v11 = vrot.slane %v2496_v26, %v4323_v28  ;;  %v4620_v26 = vmov 0.0  }
 0x721   : > { %v2533_v13 = vsel %vm2387_vm6, %v2511_v62, %v2532_v9 }
 0x722   : > { %v2487_v39 = vpop.permute.xlu0 %2486 }
 0x723   : > { %v2515_v34 = vrot.slane %v2487_v39, %v4323_v28 }
 0x725   : > { %v2534_v63 = vsel %vm2389_vm7, %v2515_v34, %v2533_v13 }
 0x726   : > { %v2490_v27 = vpop.permute.xlu0 %2489 }
 0x727   : > { %v2519_v19 = vrot.slane %v2490_v27, %v4323_v28 }
 0x729   : > { %v2535_v24 = vsel %vm2391_vm8, %v2519_v19, %v2534_v63 }
 0x72a   : > { %v2493_v42 = vpop.permute.xlu0 %2492 }
 0x72b   : > { %v2523_v20 = vrot.slane %v2493_v42, %v4323_v28 }
 0x72d   : > { %v2536_v56 = vsel %vm2393_vm9, %v2523_v20, %v2535_v24 }
 0x72e   : > { %v2499_v36 = vpop.permute.xlu0 %2498  ;;  %v2537_v21 = vsel %vm2395_vm10, %v2527_v11, %v2536_v56 }
 0x72f   : > { %v2531_v44 = vrot.slane %v2499_v36, %v4323_v28 }
 0x731   : > { %v2538_v1 = vsel %vm2397_vm11, %v2531_v44, %v2537_v21 }
 0x732   : > { %v2540_v30 = vsel %vm705_vm12, %v2538_v1, 0.0 }
 0x733   : > { %2541 = vadd.xlane.f32.xlu1 %v2540_v30 }
 0x737   : > { %2242 = vadd.xlane.f32.xlu1 %v2241_v60 }
 0x73b   : > { %2245 = vadd.xlane.f32.xlu1 %v2244_v59 }
 0x73f   : > { %2248 = vadd.xlane.f32.xlu1 %v2247_v37 }
 0x743   : > { %2251 = vadd.xlane.f32.xlu1 %v2250_v32 }
 0x747   : > { %2254 = vadd.xlane.f32.xlu1 %v2253_v41 }
 0x74b   : > { %2257 = vadd.xlane.f32.xlu1 %v2256_v29 }
 0x74f   : > { %2260 = vadd.xlane.f32.xlu1 %v2259_v23 }
 0x753   : > { %2263 = vadd.xlane.f32.xlu1 %v2262_v3 }
 0x7c0   : > { %v2542_v38 = vpop.xlane.xlu1 %2541 }
 0x7c1   : > { %v2547_v17 = vrot.slane %v2542_v38, %v3504_v40  ;;  %v2551_v54 = vrot.slane %v2542_v38, %v3562_v57  ;;  %v2555_v55 = vrot.slane %v2542_v38, %v3573_v16  ;;  %v2559_v61 = vrot.slane %v2542_v38, %v3512_v43 }
 0x7c2   : > { %v2563_v4 = vrot.slane %v2542_v38, %v3577_v18  ;;  %v2567_v51 = vrot.slane %v2542_v38, %v3593_v35  ;;  %v2571_v49 = vrot.slane %v2542_v38, %v3597_v46  ;;  %v2575_v39 = vrot.slane %v2542_v38, %v3606_v53 }
 0x7c3   : > { %3303 = vrcp.f32 %v2547_v17 }
 0x7c4   : > { %v2243_v5 = vpop.xlane.xlu1 %2242  ;;  %3305 = vrcp.f32 %v2551_v54 }
 0x7c5   : > { %v2270_v45 = vadd.f32 %v4410_v22, %v2243_v5  ;;  %3307 = vrcp.f32 %v2555_v55 }
 0x7c6   : > { %3309 = vrcp.f32 %v2559_v61 }
 0x7c7   : > { %3311 = vrcp.f32 %v2563_v4  ;;  %v2327_v7 = vmax.f32 %v2270_v45, 0.0 }
 0x7c8   : > { %v2246_v14 = vpop.xlane.xlu1 %2245  ;;  %3313 = vrcp.f32 %v2567_v51 }
 0x7c9   : > { %v2271_v0 = vadd.f32 %v4410_v22, %v2246_v14  ;;  %3315 = vrcp.f32 %v2571_v49  ;;  %v2335_v9 = vmin.f32 %v2327_v7, 2000.0 }
 0x7ca   : > { %3317 = vrcp.f32 %v2575_v39 }
 0x7cb   : > { %v2328_v52 = vmax.f32 %v2271_v0, 0.0 }
 0x7cc   : > { %v2249_v31 = vpop.xlane.xlu1 %2248 }
 0x7cd   : > { %v3304_v2 = vpop.eup %3303  ;;  %v2272_v15 = vadd.f32 %v4410_v22, %v2249_v31  ;;  %v2336_v20 = vmin.f32 %v2328_v52, 2000.0 }
 0x7ce   : > { %v3306_v33 = vpop.eup %3305  ;;  %v2585_v50 = vmul.f32 %v3304_v2, %v4349_v47 }
 0x7cf   : > { %v3308_v62 = vpop.eup %3307  ;;  %v2587_v27 = vmul.f32 %v3306_v33, %v4351_v8  ;;  %v2329_v34 = vmax.f32 %v2272_v15, 0.0 }
 0x7d0   : > { %v3310_v19 = vpop.eup %3309  ;;  %vm2600_vm1 = vcmp.gt.f32.partialorder %v2585_v50, 0.0001  ;;  %v2589_v13 = vmul.f32 %v3308_v62, %v4355_v48  ;;  %v2252_v42 = vpop.xlane.xlu1 %2251 }
 0x7d1   : > { %v3064_v63 = vsel %vm2600_vm1, 1.0, %v4620_v26  ;;  %vm2601_vm13 = vcmp.gt.f32.partialorder %v2587_v27, 0.0001  ;;  %v2337_v11 = vmin.f32 %v2329_v34, 2000.0  ;;  %v2591_v36 = vmul.f32 %v3310_v19, %v4361_v6  ;;  %v3312_v44 = vpop.eup %3311 }
 0x7d2   : > { %v4423_v24 = vmul.f32 %v3064_v63, %v2585_v50  ;;  %v4425_v56 = vmul.f32 %v3064_v63, %v2335_v9  ;;  %v3065_v47 = vsel %vm2601_vm13, 1.0, %v4620_v26  ;;  %vm2602_vm14 = vcmp.gt.f32.partialorder %v2589_v13, 0.0001  ;;  %v3314_v60 = vpop.eup %3313 }
 0x7d3   : > { %v2766_v8 = vmul.f32 %v3065_v47, %v2336_v20  ;;  %v3066_v48 = vsel %vm2602_vm14, 1.0, %v4620_v26  ;;  %v2273_v21 = vadd.f32 %v4410_v22, %v2252_v42  ;;  %v4433_v59 = vmul.f32 %v3065_v47, %v2587_v27  ;;  %v3316_v32 = vpop.eup %3315 }
 0x7d4   : > { %2641 = vperm.xlu0 %3217, %v4423_v24   ;;  %v2255_v1 = vpop.xlane.xlu1 %2254  ;;  %v2767_v41 = vmul.f32 %v3066_v48, %v2337_v11  ;;  %vm2603_vm15 = vcmp.gt.f32.partialorder %v2591_v36, 0.0001  ;;  %v2593_v6 = vmul.f32 %v3312_v44, %v4364_v12  ;;  %v4438_v17 = vmul.f32 %v3066_v48, %v2589_v13  ;;  %v3318_v5 = vpop.eup %3317 }
 0x7d5   : > { %2785 = vperm.xlu1 %3218, %v2766_v8   ;;  %v2274_v30 = vadd.f32 %v4410_v22, %v2255_v1  ;;  %v2330_v37 = vmax.f32 %v2273_v21, 0.0  ;;  %v3067_v54 = vsel %vm2603_vm15, 1.0, %v4620_v26  ;;  %v2595_v55 = vmul.f32 %v3314_v60, %v4367_v10 }
 0x7d6   : > { %v2597_v61 = vmul.f32 %v3316_v32, %v4358_v25  ;;  %vm2604_vm0 = vcmp.gt.f32.partialorder %v2593_v6, 0.0001  ;;  %v4445_v0 = vmul.f32 %v3067_v54, %v2591_v36  ;;  %v2599_v10 = vmul.f32 %v3318_v5, %v4370_v58 }
 0x7d7   : > { %v2331_v29 = vmax.f32 %v2274_v30, 0.0  ;;  %v2338_v23 = vmin.f32 %v2330_v37, 2000.0  ;;  %v3068_v49 = vsel %vm2604_vm0, 1.0, %v4620_v26  ;;  %vm2605_vm3 = vcmp.gt.f32.partialorder %v2595_v55, 0.0001 }
 0x7d8   : > { %2644 = vperm.xlu0 %3217, %v4433_v59   ;;  %v2258_v3 = vpop.xlane.xlu1 %2257  ;;  %vm2606_vm4 = vcmp.gt.f32.partialorder %v2597_v61, 0.0001  ;;  %v4451_v39 = vmul.f32 %v3068_v49, %v2593_v6  ;;  %v3069_v33 = vsel %vm2605_vm3, 1.0, %v4620_v26  ;;  %vm2607_vm5 = vcmp.gt.f32.partialorder %v2599_v10, 0.0001 }
 0x7d9   : > { %2788 = vperm.xlu1 %3218, %v2767_v41   ;;  %v2275_v38 = vadd.f32 %v4410_v22, %v2258_v3  ;;  %v2768_v45 = vmul.f32 %v3067_v54, %v2338_v23  ;;  %v2339_v12 = vmin.f32 %v2331_v29, 2000.0  ;;  %v3070_v50 = vsel %vm2606_vm4, 1.0, %v4620_v26 }
 0x7da   : > { %v4458_v19 = vmul.f32 %v3069_v33, %v2595_v55  ;;  %v3071_v9 = vsel %vm2607_vm5, 1.0, %v4620_v26  ;;  %v4462_v13 = vmul.f32 %v3070_v50, %v2597_v61 }
 0x7db   : > { %v2332_v4 = vmax.f32 %v2275_v38, 0.0  ;;  %v2769_v7 = vmul.f32 %v3068_v49, %v2339_v12  ;;  %v4465_v42 = vmul.f32 %v3071_v9, %v2599_v10 }
 0x7dc   : > { %2647 = vperm.xlu0 %3217, %v4438_v17   ;;  %v2261_v14 = vpop.xlane.xlu1 %2260 }
 0x7dd   : > { %2791 = vperm.xlu1 %3218, %v2768_v45   ;;  %v2276_v51 = vadd.f32 %v4410_v22, %v2261_v14  ;;  %v2340_v25 = vmin.f32 %v2332_v4, 2000.0 }
 0x7df   : > { %v2333_v31 = vmax.f32 %v2276_v51, 0.0  ;;  %v2770_v62 = vmul.f32 %v3069_v33, %v2340_v25 }
 0x7e0   : > { %2650 = vperm.xlu0 %3217, %v4445_v0   ;;  %v2264_v2 = vpop.xlane.xlu1 %2263 }
 0x7e1   : > { %v2341_v52 = vmin.f32 %v2333_v31, 2000.0  ;;  %2794 = vperm.xlu1 %3218, %v2769_v7   ;;  %v2277_v15 = vadd.f32 %v4410_v22, %v2264_v2 }
 0x7e3   : > { %v4455_v27 = vmul.f32 %v3070_v50, %v2341_v52  ;;  %v2334_v58 = vmax.f32 %v2277_v15, 0.0 }
 0x7e4   : > { %2653 = vperm.xlu0 %3217, %v4451_v39  }
 0x7e5   : > { %v2342_v34 = vmin.f32 %v2334_v58, 2000.0  ;;  %2797 = vperm.xlu1 %3218, %v2770_v62  }
 0x7e7   : > { %v2772_v22 = vmul.f32 %v3071_v9, %v2342_v34 }
 0x7e8   : > { %2656 = vperm.xlu0 %3217, %v4458_v19  }
 0x7ec   : > { %2659 = vperm.xlu0 %3217, %v4462_v13  }
 0x7f0   : > { %2662 = vperm.xlu0 %3217, %v4465_v42  }
 0x853   : > { %v2642_v63 = vpop.permute.xlu0 %2641 }
 0x854   : > { %v2667_v48 = vrot.slane %v2642_v63, %v4323_v28 }
 0x857   : > { %v2645_v20 = vpop.permute.xlu0 %2644 }
 0x858   : > { %v2671_v44 = vrot.slane %v2645_v20, %v4323_v28 }
 0x85a   : > { %v2696_v60 = vsel %vm2385_vm2, %v2671_v44, %v2667_v48 }
 0x85b   : > { %v2648_v47 = vpop.permute.xlu0 %2647 }
 0x85c   : > { %v2675_v26 = vrot.slane %v2648_v47, %v4323_v28 }
 0x85e   : > { %v2697_v32 = vsel %vm2387_vm6, %v2675_v26, %v2696_v60 }
 0x85f   : > { %v2651_v8 = vpop.permute.xlu0 %2650 }
 0x860   : > { %v2679_v21 = vrot.slane %v2651_v8, %v4323_v28 }
 0x862   : > { %v2698_v6 = vsel %vm2389_vm7, %v2679_v21, %v2697_v32 }
 0x863   : > { %v2654_v11 = vpop.permute.xlu0 %2653 }
 0x864   : > { %v2683_v1 = vrot.slane %v2654_v11, %v4323_v28 }
 0x866   : > { %v2699_v29 = vsel %vm2391_vm8, %v2683_v1, %v2698_v6 }
 0x867   : > { %v2657_v36 = vpop.permute.xlu0 %2656 }
 0x868   : > { %v2687_v37 = vrot.slane %v2657_v36, %v4323_v28 }
 0x86a   : > { %v2700_v3 = vsel %vm2393_vm9, %v2687_v37, %v2699_v29 }
 0x86b   : > { %v2660_v30 = vpop.permute.xlu0 %2659 }
 0x86c   : > { %v2691_v41 = vrot.slane %v2660_v30, %v4323_v28 }
 0x86e   : > { %v2701_v54 = vsel %vm2395_vm10, %v2691_v41, %v2700_v3 }
 0x86f   : > { %v2663_v23 = vpop.permute.xlu0 %2662 }
 0x870   : > { %v2695_v38 = vrot.slane %v2663_v23, %v4323_v28 }
 0x872   : > { %v2702_v55 = vsel %vm2397_vm11, %v2695_v38, %v2701_v54 }
 0x873   : > { %v2704_v61 = vsel %vm705_vm12, %v2702_v55, 0.0 }
 0x874   : > { %2705 = vadd.xlane.f32.xlu0 %v2704_v61 }
 0x88a   : > { %2782 = vperm.xlu0 %3217, %v4425_v56  }
 0x901   : > { %v2706_v5 = vpop.xlane.xlu0 %2705 }
 0x902   : > { %v2707_v45 = vadd.f32 1e-10, %v2706_v5 }
 0x904   : > { %v2716_v12 = vrot.slane %v2707_v45, %v3562_v57  ;;  %v2712_v4 = vrot.slane %v2707_v45, %v3504_v40  ;;  %v2720_v14 = vrot.slane %v2707_v45, %v3573_v16  ;;  %v2724_v51 = vrot.slane %v2707_v45, %v3512_v43 }
 0x905   : > { %v2728_v49 = vrot.slane %v2707_v45, %v3577_v18  ;;  %v2732_v56 = vrot.slane %v2707_v45, %v3593_v35  ;;  %v2736_v16 = vrot.slane %v2707_v45, %v3597_v46  ;;  %v2740_v18 = vrot.slane %v2707_v45, %v3606_v53 }
 0x906   : > { %3319 = vrcp.f32 %v2716_v12 }
 0x907   : > { %3321 = vrcp.f32 %v2712_v4 }
 0x908   : > { %3323 = vrcp.f32 %v2720_v14 }
 0x909   : > { %3325 = vrcp.f32 %v2724_v51 }
 0x90a   : > { %3327 = vrcp.f32 %v2728_v49 }
 0x90b   : > { %3329 = vrcp.f32 %v2732_v56 }
 0x90c   : > { %3331 = vrcp.f32 %v2736_v16 }
 0x90d   : > { %3333 = vrcp.f32 %v2740_v18 }
 0x910   : > { %v3320_v10 = vpop.eup %3319 }
 0x911   : > { %v3322_v7 = vpop.eup %3321  ;;  %v2752_v25 = vmul.f32 %v3320_v10, %v4433_v59 }
 0x912   : > { %v3324_v57 = vpop.eup %3323  ;;  %v2750_v40 = vmul.f32 %v3322_v7, %v4423_v24 }
 0x913   : > { %2858 = vperm.xlu0 %3217, %v2752_v25   ;;  %v2754_v43 = vmul.f32 %v3324_v57, %v4438_v17  ;;  %v3326_v31 = vpop.eup %3325 }
 0x914   : > { %2855 = vperm.xlu1 %3218, %v2750_v40   ;;  %v2756_v35 = vmul.f32 %v3326_v31, %v4445_v0  ;;  %v3328_v59 = vpop.eup %3327  ;;  %v2786_v0 = vpop.permute.xlu1 %2785 }
 0x915   : > { %v2758_v24 = vmul.f32 %v3328_v59, %v4451_v39  ;;  %v3330_v2 = vpop.eup %3329  ;;  %v2812_v58 = vrot.slane %v2786_v0, %v4323_v28 }
 0x916   : > { %v2760_v46 = vmul.f32 %v3330_v2, %v4458_v19  ;;  %v3332_v17 = vpop.eup %3331 }
 0x917   : > { %2861 = vperm.xlu0 %3217, %v2754_v43   ;;  %v2762_v52 = vmul.f32 %v3332_v17, %v4462_v13  ;;  %v3334_v15 = vpop.eup %3333 }
 0x918   : > { %2800 = vperm.xlu1 %3218, %v4455_v27   ;;  %v2764_v53 = vmul.f32 %v3334_v15, %v4465_v42  ;;  %v2789_v33 = vpop.permute.xlu1 %2788  ;;  %v2783_v27 = vpop.permute.xlu0 %2782 }
 0x919   : > { %v2808_v39 = vrot.slane %v2783_v27, %v4323_v28  ;;  %v2816_v9 = vrot.slane %v2789_v33, %v4323_v28 }
 0x91b   : > { %2864 = vperm.xlu0 %3217, %v2756_v35   ;;  %v2837_v19 = vsel %vm2385_vm2, %v2812_v58, %v2808_v39 }
 0x91c   : > { %2803 = vperm.xlu1 %3218, %v2772_v22   ;;  %v2792_v50 = vpop.permute.xlu1 %2791  ;;  %v2838_v13 = vsel %vm2387_vm6, %v2816_v9, %v2837_v19 }
 0x91d   : > { %v2820_v63 = vrot.slane %v2792_v50, %v4323_v28 }
 0x91f   : > { %2867 = vperm.xlu0 %3217, %v2758_v24   ;;  %v2839_v20 = vsel %vm2389_vm7, %v2820_v63, %v2838_v13 }
 0x920   : > { %v2795_v62 = vpop.permute.xlu1 %2794 }
 0x921   : > { %v2824_v8 = vrot.slane %v2795_v62, %v4323_v28 }
 0x923   : > { %2870 = vperm.xlu0 %3217, %v2760_v46   ;;  %v2840_v36 = vsel %vm2391_vm8, %v2824_v8, %v2839_v20 }
 0x924   : > { %v2798_v34 = vpop.permute.xlu1 %2797 }
 0x925   : > { %v2828_v26 = vrot.slane %v2798_v34, %v4323_v28 }
 0x927   : > { %2873 = vperm.xlu0 %3217, %v2762_v52   ;;  %v2841_v1 = vsel %vm2393_vm9, %v2828_v26, %v2840_v36 }
 0x92b   : > { %2876 = vperm.xlu0 %3217, %v2764_v53  }
 0x992   : > { %v2859_v22 = vpop.permute.xlu0 %2858 }
 0x993   : > { %v2856_v42 = vpop.permute.xlu1 %2855  ;;  %v2885_v6 = vrot.slane %v2859_v22, %v4323_v28 }
 0x994   : > { %v2881_v29 = vrot.slane %v2856_v42, %v4323_v28 }
 0x996   : > { %v2862_v47 = vpop.permute.xlu0 %2861  ;;  %v2910_v55 = vsel %vm2385_vm2, %v2885_v6, %v2881_v29 }
 0x997   : > { %v2801_v11 = vpop.permute.xlu1 %2800  ;;  %v2889_v23 = vrot.slane %v2862_v47, %v4323_v28 }
 0x998   : > { %v2832_v44 = vrot.slane %v2801_v11, %v4323_v28 }
 0x999   : > { %v2911_v5 = vsel %vm2387_vm6, %v2889_v23, %v2910_v55 }
 0x99a   : > { %v2865_v48 = vpop.permute.xlu0 %2864  ;;  %v2842_v60 = vsel %vm2395_vm10, %v2832_v44, %v2841_v1 }
 0x99b   : > { %v2804_v21 = vpop.permute.xlu1 %2803  ;;  %v2893_v3 = vrot.slane %v2865_v48, %v4323_v28 }
 0x99c   : > { %v2836_v30 = vrot.slane %v2804_v21, %v4323_v28 }
 0x99d   : > { %v2912_v12 = vsel %vm2389_vm7, %v2893_v3, %v2911_v5 }
 0x99e   : > { %v2843_v37 = vsel %vm2397_vm11, %v2836_v30, %v2842_v60  ;;  %v2868_v32 = vpop.permute.xlu0 %2867 }
 0x99f   : > { %2845 = vst.msk [vmem:[%s378_s19] sm:$0xff] %vm705_vm12, %v2843_v37  ;;  %v2897_v38 = vrot.slane %v2868_v32, %v4323_v28 }
 0x9a1   : > { %v2913_v4 = vsel %vm2391_vm8, %v2897_v38, %v2912_v12 }
 0x9a2   : > { %v2871_v41 = vpop.permute.xlu0 %2870 }
 0x9a3   : > { %v2901_v61 = vrot.slane %v2871_v41, %v4323_v28 }
 0x9a5   : > { %v2914_v51 = vsel %vm2393_vm9, %v2901_v61, %v2913_v4 }
 0x9a6   : > { %v2874_v54 = vpop.permute.xlu0 %2873 }
 0x9a7   : > { %v2905_v45 = vrot.slane %v2874_v54, %v4323_v28 }
 0x9a9   : > { %v2915_v10 = vsel %vm2395_vm10, %v2905_v45, %v2914_v51 }
 0x9aa   : > { %v2877_v14 = vpop.permute.xlu0 %2876 }
 0x9ab   : > { %v2909_v49 = vrot.slane %v2877_v14, %v4323_v28 }
 0x9ad   : > { %v2916_v56 = vsel %vm2397_vm11, %v2909_v49, %v2915_v10 }
 0x9ae   : > { %2918 = vst.msk [vmem:[%s382_s22] sm:$0xff] %vm705_vm12, %v2916_v56 }
 0x9af PF: > { %s20_s30 = sadd.s32 1, %s3349_s30  }
 0x9b0   : > { %p17_p5 = scmp.ge.s32.totalorder %s20_s30, 4  }
 0x9b2   :  { %19 = sbr.rel (!%p17_p5) target bundleno = 1 (0x1), region = 100 }

</bundles_post_ra>
